<compile_context>
chip_gen: v6e
topology: v6e:2x2x1
jax: 0.10.0
libtpu: 0.0.40
codegen_flags: <defaults>
</compile_context>

<pallas_src>
import math
import functools

import jax
import jax.numpy as jnp
from jax import lax
from jax.experimental import pallas as pl
from jax.experimental.pallas import tpu as pltpu


def _round_up(x, m):
    return -(-x // m) * m


def _cdf_kernel(params_ref, x_ref, o_ref, *, ft, per_ch, tc, cm):
    """One (channel-group, row-tile) block of the CDF forward.

    params_ref : SMEM (C*per_ch,) f32; per-channel layout, layer-by-layer:
                 [softplus(H_k).ravel(), tanh(a_k).ravel(), b_k.ravel()]
    x_ref      : VMEM (tc, TM, 128) input block (any float dtype; cast in-kernel)
    o_ref      : VMEM (tc, TM, 128) f32 output block
    """
    ci = pl.program_id(0)
    tm = x_ref.shape[1]
    n_chunks = tm // cm

    for t in range(tc):                     # static, small channel-fusion loop
        base = (ci * tc + t) * per_ch

        # Hoist all scalar parameter reads (SMEM sld) out of the chunk loop;
        # they are loop-invariant and feed vector-splat FMAs.
        layers = []
        off = 0
        for f_in, f_out in zip(ft[:-1], ft[1:]):
            sp = [[params_ref[base + off + o * f_in + j] for j in range(f_in)]
                  for o in range(f_out)]
            off += f_out * f_in
            ta = [params_ref[base + off + o] for o in range(f_out)]
            off += f_out
            bb = [params_ref[base + off + o] for o in range(f_out)]
            off += f_out
            layers.append((f_in, f_out, sp, ta, bb))

        def process(r0, t=t, layers=layers):
            # (cm, 128) chunk: the whole 4-layer chain stays in vregs.
            x = x_ref[t, pl.ds(r0, cm), :].astype(jnp.float32)
            logits = [x]
            for (f_in, f_out, sp, ta, bb) in layers:
                new_logits = []
                for o in range(f_out):
                    # unrolled contraction over f_in (<=3): scalar*vector FMAs on VPU
                    z = logits[0] * sp[o][0]
                    for j in range(1, f_in):
                        z = z + logits[j] * sp[o][j]
                    z = z + bb[o]
                    # tanh on activations -> EUP slot (kept; rebalance to VALU
                    # only if a bundle dump shows EUP is the binder).
                    z = z + ta[o] * jnp.tanh(z)
                    new_logits.append(z)
                logits = new_logits
            o_ref[t, pl.ds(r0, cm), :] = logits[0]     # final filter dim is 1

        if n_chunks == 1:
            process(0)
        else:
            def body(i, carry, process=process):
                process(pl.multiple_of(i * cm, cm))
                return carry
            lax.fori_loop(0, n_chunks, body, 0)


def _flatten_params(params):
    """Precompute softplus(H_k), tanh(a_k) and flatten all parameters into one
    1-D f32 array with per-channel layout matching the kernel's offsets."""
    C = params[0][0].shape[0]
    pieces = []
    for (H_k, a_k, b_k) in params:
        sp = jax.nn.softplus(H_k).reshape(C, -1)   # (C, f_out*f_in)
        ta = jnp.tanh(a_k).reshape(C, -1)          # (C, f_out)
        bb = b_k.reshape(C, -1)                    # (C, f_out)
        pieces.append(jnp.concatenate([sp, ta, bb], axis=1))
    flat = jnp.concatenate(pieces, axis=1)         # (C, per_ch)
    per_ch = int(flat.shape[1])
    return flat.reshape(-1).astype(jnp.float32), per_ch


def cdf_forward_pallas(inputs, params, *, tm_max=4096):
    """inputs: (C, 1, N) float. Returns (C, 1, N) float32."""
    C, one, N = inputs.shape
    assert one == 1

    # static filter layout: ft = (1, f1, f2, ..., 1)
    ft = (int(params[0][0].shape[2]),) + tuple(int(H.shape[1]) for H, _, _ in params)

    params_flat, per_ch = _flatten_params(params)

    # --- Balanced tile sizing: bounds padding to a few sublanes per channel ---
    itemsize = int(jnp.dtype(inputs.dtype).itemsize)
    sub = max(8, 32 // itemsize)                   # sublane granule (8 f32 / 16 bf16)
    m_raw = pl.cdiv(N, 128)                        # rows of 128 lanes per channel
    ntiles = pl.cdiv(m_raw, tm_max)
    tm = _round_up(pl.cdiv(m_raw, ntiles), sub)

    # v7x megacore: with C == 1 make sure the row axis still yields >= 2
    # parallel grid points.
    if C == 1 and ntiles == 1 and m_raw >= 2 * sub:
        ntiles = 2
        tm = _round_up(pl.cdiv(m_raw, ntiles), sub)

    # Fuse multiple channels per grid step when per-channel work is tiny, so the
    # ~600-cycle grid-step overhead is amortized; keep >= 2 grid points for the
    # 2-TC chips.
    tc = 1
    if ntiles == 1 and C > 1:
        rows_target = 1024
        max_tc = min(max(1, rows_target // tm), max(1, C // 2))
        for d in range(min(C, max_tc), 0, -1):
            if C % d == 0:
                tc = d
                break

    M_total = ntiles * tm
    n_pad = M_total * 128

    x = inputs
    if n_pad != N:
        x = jnp.pad(inputs, ((0, 0), (0, 0), (0, n_pad - N)))
    x3 = x.reshape(C, M_total, 128)                # keep caller dtype; cast in-kernel

    # Chunk size for the in-kernel loop (keeps the whole chain in vregs).
    cm = 32 if tm % 32 == 0 else (16 if tm % 16 == 0 else sub)

    grid = (C // tc, ntiles)
    kernel = functools.partial(_cdf_kernel, ft=ft, per_ch=per_ch, tc=tc, cm=cm)

    # Roofline hint for XLA scheduling around the custom call.
    flops_pe, trans_pe = 0, 0
    for f_in, f_out in zip(ft[:-1], ft[1:]):
        flops_pe += f_out * (2 * f_in + 2)
        trans_pe += f_out
    n_elem = C * N
    cost = pl.CostEstimate(
        flops=flops_pe * n_elem,
        transcendentals=trans_pe * n_elem,
        bytes_accessed=n_elem * (itemsize + 4))

    out = pl.pallas_call(
        kernel,
        out_shape=jax.ShapeDtypeStruct((C, M_total, 128), jnp.float32),
        grid_spec=pltpu.PrefetchScalarGridSpec(
            num_scalar_prefetch=1,                 # params_flat -> SMEM, resident
            grid=grid,
            in_specs=[pl.BlockSpec((tc, tm, 128), lambda ci, mi, p: (ci, mi, 0))],
            out_specs=pl.BlockSpec((tc, tm, 128), lambda ci, mi, p: (ci, mi, 0)),
        ),
        compiler_params=pltpu.CompilerParams(
            dimension_semantics=("parallel", "parallel"),
            vmem_limit_bytes=32 * 1024 * 1024),
        cost_estimate=cost,
    )(params_flat, x3)

    out = out.reshape(C, 1, n_pad)
    if n_pad != N:
        out = out[:, :, :N]
    return out


def make_cdf_params(channels, filters=(3, 3, 3), init_scale=10.0, key=None):
    """Deterministic parameter construction mirroring CDF.__init__."""
    if key is None:
        key = jax.random.PRNGKey(0)
    ft = (1,) + tuple(int(f) for f in filters) + (1,)
    scale = float(init_scale) ** (1.0 / (len(filters) + 1))
    params = []
    for k in range(len(filters) + 1):
        f_in, f_out = ft[k], ft[k + 1]
        h_init = math.log(math.expm1(1.0 / scale / f_out))
        H_k = jnp.full((channels, f_out, f_in), h_init, dtype=jnp.float32)
        a_k = jnp.zeros((channels, f_out, 1), dtype=jnp.float32)
        key, sub = jax.random.split(key)
        b_k = jax.random.uniform(sub, (channels, f_out, 1),
                                 minval=-0.5, maxval=0.5, dtype=jnp.float32)
        params.append((H_k, a_k, b_k))
    return params


def cdf_forward_ref(inputs, params):
    """Pure-JAX reference mirroring the PyTorch forward."""
    logits = inputs
    for H_k, a_k, b_k in params:
        logits = jnp.einsum('cij,cjn->cin', jax.nn.softplus(H_k), logits)
        logits = logits + b_k
        logits = logits + jnp.tanh(a_k) * jnp.tanh(logits)
    return logits


if __name__ == "__main__":
    key = jax.random.PRNGKey(0)

    def run_case(C, N, case_key):
        k_in, k_par = jax.random.split(case_key)
        inputs = jax.random.normal(k_in, (C, 1, N), dtype=jnp.float32)
        params = make_cdf_params(C, filters=(3, 3, 3), init_scale=10.0, key=k_par)
        out = jax.block_until_ready(cdf_forward_pallas(inputs, params))
        ref = cdf_forward_ref(inputs, params)
        assert out.shape == (C, 1, N)
        assert jnp.allclose(out, ref, atol=1e-5, rtol=1e-5), \
            f"C={C} N={N}: max abs err {jnp.max(jnp.abs(out - ref))}"

    k0, k1, k2 = jax.random.split(key, 3)
    run_case(4, 4096, k0)      # no padding, channel-fused grid step (tc=2)
    run_case(3, 1000, k1)      # lane padding + output-slice path
    run_case(2, 65536, k2)     # multi-chunk in-kernel fori_loop path

    print("KERNEL_OK")
</pallas_src>

<mosaic_0001>
module attributes {stable_mosaic.version = 11 : i64} {
  func.func @_cdf_kernel(%arg0: i32, %arg1: i32, %arg2: memref<176xf32, #tpu.memory_space<smem>>, %arg3: memref<2x32x128xf32, #tpu.memory_space<vmem>>, %arg4: memref<2x32x128xf32, #tpu.memory_space<vmem>>) attributes {dimension_semantics = [#tpu.dimension_semantics<parallel>, #tpu.dimension_semantics<parallel>], iteration_bounds = array<i64: 2, 1>, scalar_prefetch = 1 : i64, scratch_operands = 0 : i64, tpu.core_type = #tpu.core_type<tc>, window_params = [{transform_indices = @transform_0, window_bounds = array<i64: 2, 32, 128>}, {transform_indices = @transform_1, window_bounds = array<i64: 2, 32, 128>}]} {
    %c2_i32 = arith.constant 2 : i32
    %0 = arith.muli %arg0, %c2_i32 : i32
    %c0_i32 = arith.constant 0 : i32
    %1 = arith.addi %0, %c0_i32 : i32
    %c44_i32 = arith.constant 44 : i32
    %2 = arith.muli %1, %c44_i32 : i32
    %c0_i32_0 = arith.constant 0 : i32
    %3 = arith.addi %2, %c0_i32_0 : i32
    %c0_i32_1 = arith.constant 0 : i32
    %4 = arith.addi %3, %c0_i32_1 : i32
    %c0_i32_2 = arith.constant 0 : i32
    %5 = arith.addi %4, %c0_i32_2 : i32
    %6 = arith.index_cast %5 : i32 to index
    %7 = memref.load %arg2[%6] : memref<176xf32, #tpu.memory_space<smem>>
    %c0_i32_3 = arith.constant 0 : i32
    %8 = arith.addi %2, %c0_i32_3 : i32
    %c1_i32 = arith.constant 1 : i32
    %9 = arith.addi %8, %c1_i32 : i32
    %c0_i32_4 = arith.constant 0 : i32
    %10 = arith.addi %9, %c0_i32_4 : i32
    %11 = arith.index_cast %10 : i32 to index
    %12 = memref.load %arg2[%11] : memref<176xf32, #tpu.memory_space<smem>>
    %c0_i32_5 = arith.constant 0 : i32
    %13 = arith.addi %2, %c0_i32_5 : i32
    %c2_i32_6 = arith.constant 2 : i32
    %14 = arith.addi %13, %c2_i32_6 : i32
    %c0_i32_7 = arith.constant 0 : i32
    %15 = arith.addi %14, %c0_i32_7 : i32
    %16 = arith.index_cast %15 : i32 to index
    %17 = memref.load %arg2[%16] : memref<176xf32, #tpu.memory_space<smem>>
    %c3_i32 = arith.constant 3 : i32
    %18 = arith.addi %2, %c3_i32 : i32
    %c0_i32_8 = arith.constant 0 : i32
    %19 = arith.addi %18, %c0_i32_8 : i32
    %20 = arith.index_cast %19 : i32 to index
    %21 = memref.load %arg2[%20] : memref<176xf32, #tpu.memory_space<smem>>
    %c3_i32_9 = arith.constant 3 : i32
    %22 = arith.addi %2, %c3_i32_9 : i32
    %c1_i32_10 = arith.constant 1 : i32
    %23 = arith.addi %22, %c1_i32_10 : i32
    %24 = arith.index_cast %23 : i32 to index
    %25 = memref.load %arg2[%24] : memref<176xf32, #tpu.memory_space<smem>>
    %c3_i32_11 = arith.constant 3 : i32
    %26 = arith.addi %2, %c3_i32_11 : i32
    %c2_i32_12 = arith.constant 2 : i32
    %27 = arith.addi %26, %c2_i32_12 : i32
    %28 = arith.index_cast %27 : i32 to index
    %29 = memref.load %arg2[%28] : memref<176xf32, #tpu.memory_space<smem>>
    %c6_i32 = arith.constant 6 : i32
    %30 = arith.addi %2, %c6_i32 : i32
    %c0_i32_13 = arith.constant 0 : i32
    %31 = arith.addi %30, %c0_i32_13 : i32
    %32 = arith.index_cast %31 : i32 to index
    %33 = memref.load %arg2[%32] : memref<176xf32, #tpu.memory_space<smem>>
    %c6_i32_14 = arith.constant 6 : i32
    %34 = arith.addi %2, %c6_i32_14 : i32
    %c1_i32_15 = arith.constant 1 : i32
    %35 = arith.addi %34, %c1_i32_15 : i32
    %36 = arith.index_cast %35 : i32 to index
    %37 = memref.load %arg2[%36] : memref<176xf32, #tpu.memory_space<smem>>
    %c6_i32_16 = arith.constant 6 : i32
    %38 = arith.addi %2, %c6_i32_16 : i32
    %c2_i32_17 = arith.constant 2 : i32
    %39 = arith.addi %38, %c2_i32_17 : i32
    %40 = arith.index_cast %39 : i32 to index
    %41 = memref.load %arg2[%40] : memref<176xf32, #tpu.memory_space<smem>>
    %c9_i32 = arith.constant 9 : i32
    %42 = arith.addi %2, %c9_i32 : i32
    %c0_i32_18 = arith.constant 0 : i32
    %43 = arith.addi %42, %c0_i32_18 : i32
    %c0_i32_19 = arith.constant 0 : i32
    %44 = arith.addi %43, %c0_i32_19 : i32
    %45 = arith.index_cast %44 : i32 to index
    %46 = memref.load %arg2[%45] : memref<176xf32, #tpu.memory_space<smem>>
    %c9_i32_20 = arith.constant 9 : i32
    %47 = arith.addi %2, %c9_i32_20 : i32
    %c0_i32_21 = arith.constant 0 : i32
    %48 = arith.addi %47, %c0_i32_21 : i32
    %c1_i32_22 = arith.constant 1 : i32
    %49 = arith.addi %48, %c1_i32_22 : i32
    %50 = arith.index_cast %49 : i32 to index
    %51 = memref.load %arg2[%50] : memref<176xf32, #tpu.memory_space<smem>>
    %c9_i32_23 = arith.constant 9 : i32
    %52 = arith.addi %2, %c9_i32_23 : i32
    %c0_i32_24 = arith.constant 0 : i32
    %53 = arith.addi %52, %c0_i32_24 : i32
    %c2_i32_25 = arith.constant 2 : i32
    %54 = arith.addi %53, %c2_i32_25 : i32
    %55 = arith.index_cast %54 : i32 to index
    %56 = memref.load %arg2[%55] : memref<176xf32, #tpu.memory_space<smem>>
    %c9_i32_26 = arith.constant 9 : i32
    %57 = arith.addi %2, %c9_i32_26 : i32
    %c3_i32_27 = arith.constant 3 : i32
    %58 = arith.addi %57, %c3_i32_27 : i32
    %c0_i32_28 = arith.constant 0 : i32
    %59 = arith.addi %58, %c0_i32_28 : i32
    %60 = arith.index_cast %59 : i32 to index
    %61 = memref.load %arg2[%60] : memref<176xf32, #tpu.memory_space<smem>>
    %c9_i32_29 = arith.constant 9 : i32
    %62 = arith.addi %2, %c9_i32_29 : i32
    %c3_i32_30 = arith.constant 3 : i32
    %63 = arith.addi %62, %c3_i32_30 : i32
    %c1_i32_31 = arith.constant 1 : i32
    %64 = arith.addi %63, %c1_i32_31 : i32
    %65 = arith.index_cast %64 : i32 to index
    %66 = memref.load %arg2[%65] : memref<176xf32, #tpu.memory_space<smem>>
    %c9_i32_32 = arith.constant 9 : i32
    %67 = arith.addi %2, %c9_i32_32 : i32
    %c3_i32_33 = arith.constant 3 : i32
    %68 = arith.addi %67, %c3_i32_33 : i32
    %c2_i32_34 = arith.constant 2 : i32
    %69 = arith.addi %68, %c2_i32_34 : i32
    %70 = arith.index_cast %69 : i32 to index
    %71 = memref.load %arg2[%70] : memref<176xf32, #tpu.memory_space<smem>>
    %c9_i32_35 = arith.constant 9 : i32
    %72 = arith.addi %2, %c9_i32_35 : i32
    %c6_i32_36 = arith.constant 6 : i32
    %73 = arith.addi %72, %c6_i32_36 : i32
    %c0_i32_37 = arith.constant 0 : i32
    %74 = arith.addi %73, %c0_i32_37 : i32
    %75 = arith.index_cast %74 : i32 to index
    %76 = memref.load %arg2[%75] : memref<176xf32, #tpu.memory_space<smem>>
    %c9_i32_38 = arith.constant 9 : i32
    %77 = arith.addi %2, %c9_i32_38 : i32
    %c6_i32_39 = arith.constant 6 : i32
    %78 = arith.addi %77, %c6_i32_39 : i32
    %c1_i32_40 = arith.constant 1 : i32
    %79 = arith.addi %78, %c1_i32_40 : i32
    %80 = arith.index_cast %79 : i32 to index
    %81 = memref.load %arg2[%80] : memref<176xf32, #tpu.memory_space<smem>>
    %c9_i32_41 = arith.constant 9 : i32
    %82 = arith.addi %2, %c9_i32_41 : i32
    %c6_i32_42 = arith.constant 6 : i32
    %83 = arith.addi %82, %c6_i32_42 : i32
    %c2_i32_43 = arith.constant 2 : i32
    %84 = arith.addi %83, %c2_i32_43 : i32
    %85 = arith.index_cast %84 : i32 to index
    %86 = memref.load %arg2[%85] : memref<176xf32, #tpu.memory_space<smem>>
    %c18_i32 = arith.constant 18 : i32
    %87 = arith.addi %2, %c18_i32 : i32
    %c0_i32_44 = arith.constant 0 : i32
    %88 = arith.addi %87, %c0_i32_44 : i32
    %89 = arith.index_cast %88 : i32 to index
    %90 = memref.load %arg2[%89] : memref<176xf32, #tpu.memory_space<smem>>
    %c18_i32_45 = arith.constant 18 : i32
    %91 = arith.addi %2, %c18_i32_45 : i32
    %c1_i32_46 = arith.constant 1 : i32
    %92 = arith.addi %91, %c1_i32_46 : i32
    %93 = arith.index_cast %92 : i32 to index
    %94 = memref.load %arg2[%93] : memref<176xf32, #tpu.memory_space<smem>>
    %c18_i32_47 = arith.constant 18 : i32
    %95 = arith.addi %2, %c18_i32_47 : i32
    %c2_i32_48 = arith.constant 2 : i32
    %96 = arith.addi %95, %c2_i32_48 : i32
    %97 = arith.index_cast %96 : i32 to index
    %98 = memref.load %arg2[%97] : memref<176xf32, #tpu.memory_space<smem>>
    %c21_i32 = arith.constant 21 : i32
    %99 = arith.addi %2, %c21_i32 : i32
    %c0_i32_49 = arith.constant 0 : i32
    %100 = arith.addi %99, %c0_i32_49 : i32
    %101 = arith.index_cast %100 : i32 to index
    %102 = memref.load %arg2[%101] : memref<176xf32, #tpu.memory_space<smem>>
    %c21_i32_50 = arith.constant 21 : i32
    %103 = arith.addi %2, %c21_i32_50 : i32
    %c1_i32_51 = arith.constant 1 : i32
    %104 = arith.addi %103, %c1_i32_51 : i32
    %105 = arith.index_cast %104 : i32 to index
    %106 = memref.load %arg2[%105] : memref<176xf32, #tpu.memory_space<smem>>
    %c21_i32_52 = arith.constant 21 : i32
    %107 = arith.addi %2, %c21_i32_52 : i32
    %c2_i32_53 = arith.constant 2 : i32
    %108 = arith.addi %107, %c2_i32_53 : i32
    %109 = arith.index_cast %108 : i32 to index
    %110 = memref.load %arg2[%109] : memref<176xf32, #tpu.memory_space<smem>>
    %c24_i32 = arith.constant 24 : i32
    %111 = arith.addi %2, %c24_i32 : i32
    %c0_i32_54 = arith.constant 0 : i32
    %112 = arith.addi %111, %c0_i32_54 : i32
    %c0_i32_55 = arith.constant 0 : i32
    %113 = arith.addi %112, %c0_i32_55 : i32
    %114 = arith.index_cast %113 : i32 to index
    %115 = memref.load %arg2[%114] : memref<176xf32, #tpu.memory_space<smem>>
    %c24_i32_56 = arith.constant 24 : i32
    %116 = arith.addi %2, %c24_i32_56 : i32
    %c0_i32_57 = arith.constant 0 : i32
    %117 = arith.addi %116, %c0_i32_57 : i32
    %c1_i32_58 = arith.constant 1 : i32
    %118 = arith.addi %117, %c1_i32_58 : i32
    %119 = arith.index_cast %118 : i32 to index
    %120 = memref.load %arg2[%119] : memref<176xf32, #tpu.memory_space<smem>>
    %c24_i32_59 = arith.constant 24 : i32
    %121 = arith.addi %2, %c24_i32_59 : i32
    %c0_i32_60 = arith.constant 0 : i32
    %122 = arith.addi %121, %c0_i32_60 : i32
    %c2_i32_61 = arith.constant 2 : i32
    %123 = arith.addi %122, %c2_i32_61 : i32
    %124 = arith.index_cast %123 : i32 to index
    %125 = memref.load %arg2[%124] : memref<176xf32, #tpu.memory_space<smem>>
    %c24_i32_62 = arith.constant 24 : i32
    %126 = arith.addi %2, %c24_i32_62 : i32
    %c3_i32_63 = arith.constant 3 : i32
    %127 = arith.addi %126, %c3_i32_63 : i32
    %c0_i32_64 = arith.constant 0 : i32
    %128 = arith.addi %127, %c0_i32_64 : i32
    %129 = arith.index_cast %128 : i32 to index
    %130 = memref.load %arg2[%129] : memref<176xf32, #tpu.memory_space<smem>>
    %c24_i32_65 = arith.constant 24 : i32
    %131 = arith.addi %2, %c24_i32_65 : i32
    %c3_i32_66 = arith.constant 3 : i32
    %132 = arith.addi %131, %c3_i32_66 : i32
    %c1_i32_67 = arith.constant 1 : i32
    %133 = arith.addi %132, %c1_i32_67 : i32
    %134 = arith.index_cast %133 : i32 to index
    %135 = memref.load %arg2[%134] : memref<176xf32, #tpu.memory_space<smem>>
    %c24_i32_68 = arith.constant 24 : i32
    %136 = arith.addi %2, %c24_i32_68 : i32
    %c3_i32_69 = arith.constant 3 : i32
    %137 = arith.addi %136, %c3_i32_69 : i32
    %c2_i32_70 = arith.constant 2 : i32
    %138 = arith.addi %137, %c2_i32_70 : i32
    %139 = arith.index_cast %138 : i32 to index
    %140 = memref.load %arg2[%139] : memref<176xf32, #tpu.memory_space<smem>>
    %c24_i32_71 = arith.constant 24 : i32
    %141 = arith.addi %2, %c24_i32_71 : i32
    %c6_i32_72 = arith.constant 6 : i32
    %142 = arith.addi %141, %c6_i32_72 : i32
    %c0_i32_73 = arith.constant 0 : i32
    %143 = arith.addi %142, %c0_i32_73 : i32
    %144 = arith.index_cast %143 : i32 to index
    %145 = memref.load %arg2[%144] : memref<176xf32, #tpu.memory_space<smem>>
    %c24_i32_74 = arith.constant 24 : i32
    %146 = arith.addi %2, %c24_i32_74 : i32
    %c6_i32_75 = arith.constant 6 : i32
    %147 = arith.addi %146, %c6_i32_75 : i32
    %c1_i32_76 = arith.constant 1 : i32
    %148 = arith.addi %147, %c1_i32_76 : i32
    %149 = arith.index_cast %148 : i32 to index
    %150 = memref.load %arg2[%149] : memref<176xf32, #tpu.memory_space<smem>>
    %c24_i32_77 = arith.constant 24 : i32
    %151 = arith.addi %2, %c24_i32_77 : i32
    %c6_i32_78 = arith.constant 6 : i32
    %152 = arith.addi %151, %c6_i32_78 : i32
    %c2_i32_79 = arith.constant 2 : i32
    %153 = arith.addi %152, %c2_i32_79 : i32
    %154 = arith.index_cast %153 : i32 to index
    %155 = memref.load %arg2[%154] : memref<176xf32, #tpu.memory_space<smem>>
    %c33_i32 = arith.constant 33 : i32
    %156 = arith.addi %2, %c33_i32 : i32
    %c0_i32_80 = arith.constant 0 : i32
    %157 = arith.addi %156, %c0_i32_80 : i32
    %158 = arith.index_cast %157 : i32 to index
    %159 = memref.load %arg2[%158] : memref<176xf32, #tpu.memory_space<smem>>
    %c33_i32_81 = arith.constant 33 : i32
    %160 = arith.addi %2, %c33_i32_81 : i32
    %c1_i32_82 = arith.constant 1 : i32
    %161 = arith.addi %160, %c1_i32_82 : i32
    %162 = arith.index_cast %161 : i32 to index
    %163 = memref.load %arg2[%162] : memref<176xf32, #tpu.memory_space<smem>>
    %c33_i32_83 = arith.constant 33 : i32
    %164 = arith.addi %2, %c33_i32_83 : i32
    %c2_i32_84 = arith.constant 2 : i32
    %165 = arith.addi %164, %c2_i32_84 : i32
    %166 = arith.index_cast %165 : i32 to index
    %167 = memref.load %arg2[%166] : memref<176xf32, #tpu.memory_space<smem>>
    %c36_i32 = arith.constant 36 : i32
    %168 = arith.addi %2, %c36_i32 : i32
    %c0_i32_85 = arith.constant 0 : i32
    %169 = arith.addi %168, %c0_i32_85 : i32
    %170 = arith.index_cast %169 : i32 to index
    %171 = memref.load %arg2[%170] : memref<176xf32, #tpu.memory_space<smem>>
    %c36_i32_86 = arith.constant 36 : i32
    %172 = arith.addi %2, %c36_i32_86 : i32
    %c1_i32_87 = arith.constant 1 : i32
    %173 = arith.addi %172, %c1_i32_87 : i32
    %174 = arith.index_cast %173 : i32 to index
    %175 = memref.load %arg2[%174] : memref<176xf32, #tpu.memory_space<smem>>
    %c36_i32_88 = arith.constant 36 : i32
    %176 = arith.addi %2, %c36_i32_88 : i32
    %c2_i32_89 = arith.constant 2 : i32
    %177 = arith.addi %176, %c2_i32_89 : i32
    %178 = arith.index_cast %177 : i32 to index
    %179 = memref.load %arg2[%178] : memref<176xf32, #tpu.memory_space<smem>>
    %c39_i32 = arith.constant 39 : i32
    %180 = arith.addi %2, %c39_i32 : i32
    %c0_i32_90 = arith.constant 0 : i32
    %181 = arith.addi %180, %c0_i32_90 : i32
    %c0_i32_91 = arith.constant 0 : i32
    %182 = arith.addi %181, %c0_i32_91 : i32
    %183 = arith.index_cast %182 : i32 to index
    %184 = memref.load %arg2[%183] : memref<176xf32, #tpu.memory_space<smem>>
    %c39_i32_92 = arith.constant 39 : i32
    %185 = arith.addi %2, %c39_i32_92 : i32
    %c0_i32_93 = arith.constant 0 : i32
    %186 = arith.addi %185, %c0_i32_93 : i32
    %c1_i32_94 = arith.constant 1 : i32
    %187 = arith.addi %186, %c1_i32_94 : i32
    %188 = arith.index_cast %187 : i32 to index
    %189 = memref.load %arg2[%188] : memref<176xf32, #tpu.memory_space<smem>>
    %c39_i32_95 = arith.constant 39 : i32
    %190 = arith.addi %2, %c39_i32_95 : i32
    %c0_i32_96 = arith.constant 0 : i32
    %191 = arith.addi %190, %c0_i32_96 : i32
    %c2_i32_97 = arith.constant 2 : i32
    %192 = arith.addi %191, %c2_i32_97 : i32
    %193 = arith.index_cast %192 : i32 to index
    %194 = memref.load %arg2[%193] : memref<176xf32, #tpu.memory_space<smem>>
    %c42_i32 = arith.constant 42 : i32
    %195 = arith.addi %2, %c42_i32 : i32
    %c0_i32_98 = arith.constant 0 : i32
    %196 = arith.addi %195, %c0_i32_98 : i32
    %197 = arith.index_cast %196 : i32 to index
    %198 = memref.load %arg2[%197] : memref<176xf32, #tpu.memory_space<smem>>
    %c43_i32 = arith.constant 43 : i32
    %199 = arith.addi %2, %c43_i32 : i32
    %c0_i32_99 = arith.constant 0 : i32
    %200 = arith.addi %199, %c0_i32_99 : i32
    %201 = arith.index_cast %200 : i32 to index
    %202 = memref.load %arg2[%201] : memref<176xf32, #tpu.memory_space<smem>>
    %c0 = arith.constant 0 : index
    %c0_100 = arith.constant 0 : index
    %c0_101 = arith.constant 0 : index
    %203 = vector.load %arg3[%c0, %c0_100, %c0_101] : memref<2x32x128xf32, #tpu.memory_space<vmem>>, vector<1x32x128xf32>
    %204 = vector.shape_cast %203 : vector<1x32x128xf32> to vector<32x128xf32>
    %205 = vector.broadcast %7 : f32 to vector<32x128xf32>
    %206 = arith.mulf %204, %205 : vector<32x128xf32>
    %207 = vector.broadcast %33 : f32 to vector<32x128xf32>
    %208 = arith.addf %206, %207 : vector<32x128xf32>
    %209 = math.tanh %208 : vector<32x128xf32>
    %210 = vector.broadcast %21 : f32 to vector<32x128xf32>
    %211 = arith.mulf %210, %209 : vector<32x128xf32>
    %212 = arith.addf %208, %211 : vector<32x128xf32>
    %213 = vector.broadcast %12 : f32 to vector<32x128xf32>
    %214 = arith.mulf %204, %213 : vector<32x128xf32>
    %215 = vector.broadcast %37 : f32 to vector<32x128xf32>
    %216 = arith.addf %214, %215 : vector<32x128xf32>
    %217 = math.tanh %216 : vector<32x128xf32>
    %218 = vector.broadcast %25 : f32 to vector<32x128xf32>
    %219 = arith.mulf %218, %217 : vector<32x128xf32>
    %220 = arith.addf %216, %219 : vector<32x128xf32>
    %221 = vector.broadcast %17 : f32 to vector<32x128xf32>
    %222 = arith.mulf %204, %221 : vector<32x128xf32>
    %223 = vector.broadcast %41 : f32 to vector<32x128xf32>
    %224 = arith.addf %222, %223 : vector<32x128xf32>
    %225 = math.tanh %224 : vector<32x128xf32>
    %226 = vector.broadcast %29 : f32 to vector<32x128xf32>
    %227 = arith.mulf %226, %225 : vector<32x128xf32>
    %228 = arith.addf %224, %227 : vector<32x128xf32>
    %229 = vector.broadcast %46 : f32 to vector<32x128xf32>
    %230 = arith.mulf %212, %229 : vector<32x128xf32>
    %231 = vector.broadcast %51 : f32 to vector<32x128xf32>
    %232 = arith.mulf %220, %231 : vector<32x128xf32>
    %233 = arith.addf %230, %232 : vector<32x128xf32>
    %234 = vector.broadcast %56 : f32 to vector<32x128xf32>
    %235 = arith.mulf %228, %234 : vector<32x128xf32>
    %236 = arith.addf %233, %235 : vector<32x128xf32>
    %237 = vector.broadcast %102 : f32 to vector<32x128xf32>
    %238 = arith.addf %236, %237 : vector<32x128xf32>
    %239 = math.tanh %238 : vector<32x128xf32>
    %240 = vector.broadcast %90 : f32 to vector<32x128xf32>
    %241 = arith.mulf %240, %239 : vector<32x128xf32>
    %242 = arith.addf %238, %241 : vector<32x128xf32>
    %243 = vector.broadcast %61 : f32 to vector<32x128xf32>
    %244 = arith.mulf %212, %243 : vector<32x128xf32>
    %245 = vector.broadcast %66 : f32 to vector<32x128xf32>
    %246 = arith.mulf %220, %245 : vector<32x128xf32>
    %247 = arith.addf %244, %246 : vector<32x128xf32>
    %248 = vector.broadcast %71 : f32 to vector<32x128xf32>
    %249 = arith.mulf %228, %248 : vector<32x128xf32>
    %250 = arith.addf %247, %249 : vector<32x128xf32>
    %251 = vector.broadcast %106 : f32 to vector<32x128xf32>
    %252 = arith.addf %250, %251 : vector<32x128xf32>
    %253 = math.tanh %252 : vector<32x128xf32>
    %254 = vector.broadcast %94 : f32 to vector<32x128xf32>
    %255 = arith.mulf %254, %253 : vector<32x128xf32>
    %256 = arith.addf %252, %255 : vector<32x128xf32>
    %257 = vector.broadcast %76 : f32 to vector<32x128xf32>
    %258 = arith.mulf %212, %257 : vector<32x128xf32>
    %259 = vector.broadcast %81 : f32 to vector<32x128xf32>
    %260 = arith.mulf %220, %259 : vector<32x128xf32>
    %261 = arith.addf %258, %260 : vector<32x128xf32>
    %262 = vector.broadcast %86 : f32 to vector<32x128xf32>
    %263 = arith.mulf %228, %262 : vector<32x128xf32>
    %264 = arith.addf %261, %263 : vector<32x128xf32>
    %265 = vector.broadcast %110 : f32 to vector<32x128xf32>
    %266 = arith.addf %264, %265 : vector<32x128xf32>
    %267 = math.tanh %266 : vector<32x128xf32>
    %268 = vector.broadcast %98 : f32 to vector<32x128xf32>
    %269 = arith.mulf %268, %267 : vector<32x128xf32>
    %270 = arith.addf %266, %269 : vector<32x128xf32>
    %271 = vector.broadcast %115 : f32 to vector<32x128xf32>
    %272 = arith.mulf %242, %271 : vector<32x128xf32>
    %273 = vector.broadcast %120 : f32 to vector<32x128xf32>
    %274 = arith.mulf %256, %273 : vector<32x128xf32>
    %275 = arith.addf %272, %274 : vector<32x128xf32>
    %276 = vector.broadcast %125 : f32 to vector<32x128xf32>
    %277 = arith.mulf %270, %276 : vector<32x128xf32>
    %278 = arith.addf %275, %277 : vector<32x128xf32>
    %279 = vector.broadcast %171 : f32 to vector<32x128xf32>
    %280 = arith.addf %278, %279 : vector<32x128xf32>
    %281 = math.tanh %280 : vector<32x128xf32>
    %282 = vector.broadcast %159 : f32 to vector<32x128xf32>
    %283 = arith.mulf %282, %281 : vector<32x128xf32>
    %284 = arith.addf %280, %283 : vector<32x128xf32>
    %285 = vector.broadcast %130 : f32 to vector<32x128xf32>
    %286 = arith.mulf %242, %285 : vector<32x128xf32>
    %287 = vector.broadcast %135 : f32 to vector<32x128xf32>
    %288 = arith.mulf %256, %287 : vector<32x128xf32>
    %289 = arith.addf %286, %288 : vector<32x128xf32>
    %290 = vector.broadcast %140 : f32 to vector<32x128xf32>
    %291 = arith.mulf %270, %290 : vector<32x128xf32>
    %292 = arith.addf %289, %291 : vector<32x128xf32>
    %293 = vector.broadcast %175 : f32 to vector<32x128xf32>
    %294 = arith.addf %292, %293 : vector<32x128xf32>
    %295 = math.tanh %294 : vector<32x128xf32>
    %296 = vector.broadcast %163 : f32 to vector<32x128xf32>
    %297 = arith.mulf %296, %295 : vector<32x128xf32>
    %298 = arith.addf %294, %297 : vector<32x128xf32>
    %299 = vector.broadcast %145 : f32 to vector<32x128xf32>
    %300 = arith.mulf %242, %299 : vector<32x128xf32>
    %301 = vector.broadcast %150 : f32 to vector<32x128xf32>
    %302 = arith.mulf %256, %301 : vector<32x128xf32>
    %303 = arith.addf %300, %302 : vector<32x128xf32>
    %304 = vector.broadcast %155 : f32 to vector<32x128xf32>
    %305 = arith.mulf %270, %304 : vector<32x128xf32>
    %306 = arith.addf %303, %305 : vector<32x128xf32>
    %307 = vector.broadcast %179 : f32 to vector<32x128xf32>
    %308 = arith.addf %306, %307 : vector<32x128xf32>
    %309 = math.tanh %308 : vector<32x128xf32>
    %310 = vector.broadcast %167 : f32 to vector<32x128xf32>
    %311 = arith.mulf %310, %309 : vector<32x128xf32>
    %312 = arith.addf %308, %311 : vector<32x128xf32>
    %313 = vector.broadcast %184 : f32 to vector<32x128xf32>
    %314 = arith.mulf %284, %313 : vector<32x128xf32>
    %315 = vector.broadcast %189 : f32 to vector<32x128xf32>
    %316 = arith.mulf %298, %315 : vector<32x128xf32>
    %317 = arith.addf %314, %316 : vector<32x128xf32>
    %318 = vector.broadcast %194 : f32 to vector<32x128xf32>
    %319 = arith.mulf %312, %318 : vector<32x128xf32>
    %320 = arith.addf %317, %319 : vector<32x128xf32>
    %321 = vector.broadcast %202 : f32 to vector<32x128xf32>
    %322 = arith.addf %320, %321 : vector<32x128xf32>
    %323 = math.tanh %322 : vector<32x128xf32>
    %324 = vector.broadcast %198 : f32 to vector<32x128xf32>
    %325 = arith.mulf %324, %323 : vector<32x128xf32>
    %326 = arith.addf %322, %325 : vector<32x128xf32>
    %c0_102 = arith.constant 0 : index
    %c0_103 = arith.constant 0 : index
    %c0_104 = arith.constant 0 : index
    %327 = vector.load %arg4[%c0_102, %c0_103, %c0_104] : memref<2x32x128xf32, #tpu.memory_space<vmem>>, vector<1x32x128xf32>
    %328 = vector.shape_cast %327 : vector<1x32x128xf32> to vector<32x128xf32>
    %329 = vector.shape_cast %326 : vector<32x128xf32> to vector<1x32x128xf32>
    tpu.vector_store %arg4[%c0_102, %c0_103, %c0_104], %329 {strides = array<i32>} : memref<2x32x128xf32, #tpu.memory_space<vmem>>, vector<1x32x128xf32>,
    %c2_i32_105 = arith.constant 2 : i32
    %330 = arith.muli %arg0, %c2_i32_105 : i32
    %c1_i32_106 = arith.constant 1 : i32
    %331 = arith.addi %330, %c1_i32_106 : i32
    %c44_i32_107 = arith.constant 44 : i32
    %332 = arith.muli %331, %c44_i32_107 : i32
    %c0_i32_108 = arith.constant 0 : i32
    %333 = arith.addi %332, %c0_i32_108 : i32
    %c0_i32_109 = arith.constant 0 : i32
    %334 = arith.addi %333, %c0_i32_109 : i32
    %c0_i32_110 = arith.constant 0 : i32
    %335 = arith.addi %334, %c0_i32_110 : i32
    %336 = arith.index_cast %335 : i32 to index
    %337 = memref.load %arg2[%336] : memref<176xf32, #tpu.memory_space<smem>>
    %c0_i32_111 = arith.constant 0 : i32
    %338 = arith.addi %332, %c0_i32_111 : i32
    %c1_i32_112 = arith.constant 1 : i32
    %339 = arith.addi %338, %c1_i32_112 : i32
    %c0_i32_113 = arith.constant 0 : i32
    %340 = arith.addi %339, %c0_i32_113 : i32
    %341 = arith.index_cast %340 : i32 to index
    %342 = memref.load %arg2[%341] : memref<176xf32, #tpu.memory_space<smem>>
    %c0_i32_114 = arith.constant 0 : i32
    %343 = arith.addi %332, %c0_i32_114 : i32
    %c2_i32_115 = arith.constant 2 : i32
    %344 = arith.addi %343, %c2_i32_115 : i32
    %c0_i32_116 = arith.constant 0 : i32
    %345 = arith.addi %344, %c0_i32_116 : i32
    %346 = arith.index_cast %345 : i32 to index
    %347 = memref.load %arg2[%346] : memref<176xf32, #tpu.memory_space<smem>>
    %c3_i32_117 = arith.constant 3 : i32
    %348 = arith.addi %332, %c3_i32_117 : i32
    %c0_i32_118 = arith.constant 0 : i32
    %349 = arith.addi %348, %c0_i32_118 : i32
    %350 = arith.index_cast %349 : i32 to index
    %351 = memref.load %arg2[%350] : memref<176xf32, #tpu.memory_space<smem>>
    %c3_i32_119 = arith.constant 3 : i32
    %352 = arith.addi %332, %c3_i32_119 : i32
    %c1_i32_120 = arith.constant 1 : i32
    %353 = arith.addi %352, %c1_i32_120 : i32
    %354 = arith.index_cast %353 : i32 to index
    %355 = memref.load %arg2[%354] : memref<176xf32, #tpu.memory_space<smem>>
    %c3_i32_121 = arith.constant 3 : i32
    %356 = arith.addi %332, %c3_i32_121 : i32
    %c2_i32_122 = arith.constant 2 : i32
    %357 = arith.addi %356, %c2_i32_122 : i32
    %358 = arith.index_cast %357 : i32 to index
    %359 = memref.load %arg2[%358] : memref<176xf32, #tpu.memory_space<smem>>
    %c6_i32_123 = arith.constant 6 : i32
    %360 = arith.addi %332, %c6_i32_123 : i32
    %c0_i32_124 = arith.constant 0 : i32
    %361 = arith.addi %360, %c0_i32_124 : i32
    %362 = arith.index_cast %361 : i32 to index
    %363 = memref.load %arg2[%362] : memref<176xf32, #tpu.memory_space<smem>>
    %c6_i32_125 = arith.constant 6 : i32
    %364 = arith.addi %332, %c6_i32_125 : i32
    %c1_i32_126 = arith.constant 1 : i32
    %365 = arith.addi %364, %c1_i32_126 : i32
    %366 = arith.index_cast %365 : i32 to index
    %367 = memref.load %arg2[%366] : memref<176xf32, #tpu.memory_space<smem>>
    %c6_i32_127 = arith.constant 6 : i32
    %368 = arith.addi %332, %c6_i32_127 : i32
    %c2_i32_128 = arith.constant 2 : i32
    %369 = arith.addi %368, %c2_i32_128 : i32
    %370 = arith.index_cast %369 : i32 to index
    %371 = memref.load %arg2[%370] : memref<176xf32, #tpu.memory_space<smem>>
    %c9_i32_129 = arith.constant 9 : i32
    %372 = arith.addi %332, %c9_i32_129 : i32
    %c0_i32_130 = arith.constant 0 : i32
    %373 = arith.addi %372, %c0_i32_130 : i32
    %c0_i32_131 = arith.constant 0 : i32
    %374 = arith.addi %373, %c0_i32_131 : i32
    %375 = arith.index_cast %374 : i32 to index
    %376 = memref.load %arg2[%375] : memref<176xf32, #tpu.memory_space<smem>>
    %c9_i32_132 = arith.constant 9 : i32
    %377 = arith.addi %332, %c9_i32_132 : i32
    %c0_i32_133 = arith.constant 0 : i32
    %378 = arith.addi %377, %c0_i32_133 : i32
    %c1_i32_134 = arith.constant 1 : i32
    %379 = arith.addi %378, %c1_i32_134 : i32
    %380 = arith.index_cast %379 : i32 to index
    %381 = memref.load %arg2[%380] : memref<176xf32, #tpu.memory_space<smem>>
    %c9_i32_135 = arith.constant 9 : i32
    %382 = arith.addi %332, %c9_i32_135 : i32
    %c0_i32_136 = arith.constant 0 : i32
    %383 = arith.addi %382, %c0_i32_136 : i32
    %c2_i32_137 = arith.constant 2 : i32
    %384 = arith.addi %383, %c2_i32_137 : i32
    %385 = arith.index_cast %384 : i32 to index
    %386 = memref.load %arg2[%385] : memref<176xf32, #tpu.memory_space<smem>>
    %c9_i32_138 = arith.constant 9 : i32
    %387 = arith.addi %332, %c9_i32_138 : i32
    %c3_i32_139 = arith.constant 3 : i32
    %388 = arith.addi %387, %c3_i32_139 : i32
    %c0_i32_140 = arith.constant 0 : i32
    %389 = arith.addi %388, %c0_i32_140 : i32
    %390 = arith.index_cast %389 : i32 to index
    %391 = memref.load %arg2[%390] : memref<176xf32, #tpu.memory_space<smem>>
    %c9_i32_141 = arith.constant 9 : i32
    %392 = arith.addi %332, %c9_i32_141 : i32
    %c3_i32_142 = arith.constant 3 : i32
    %393 = arith.addi %392, %c3_i32_142 : i32
    %c1_i32_143 = arith.constant 1 : i32
    %394 = arith.addi %393, %c1_i32_143 : i32
    %395 = arith.index_cast %394 : i32 to index
    %396 = memref.load %arg2[%395] : memref<176xf32, #tpu.memory_space<smem>>
    %c9_i32_144 = arith.constant 9 : i32
    %397 = arith.addi %332, %c9_i32_144 : i32
    %c3_i32_145 = arith.constant 3 : i32
    %398 = arith.addi %397, %c3_i32_145 : i32
    %c2_i32_146 = arith.constant 2 : i32
    %399 = arith.addi %398, %c2_i32_146 : i32
    %400 = arith.index_cast %399 : i32 to index
    %401 = memref.load %arg2[%400] : memref<176xf32, #tpu.memory_space<smem>>
    %c9_i32_147 = arith.constant 9 : i32
    %402 = arith.addi %332, %c9_i32_147 : i32
    %c6_i32_148 = arith.constant 6 : i32
    %403 = arith.addi %402, %c6_i32_148 : i32
    %c0_i32_149 = arith.constant 0 : i32
    %404 = arith.addi %403, %c0_i32_149 : i32
    %405 = arith.index_cast %404 : i32 to index
    %406 = memref.load %arg2[%405] : memref<176xf32, #tpu.memory_space<smem>>
    %c9_i32_150 = arith.constant 9 : i32
    %407 = arith.addi %332, %c9_i32_150 : i32
    %c6_i32_151 = arith.constant 6 : i32
    %408 = arith.addi %407, %c6_i32_151 : i32
    %c1_i32_152 = arith.constant 1 : i32
    %409 = arith.addi %408, %c1_i32_152 : i32
    %410 = arith.index_cast %409 : i32 to index
    %411 = memref.load %arg2[%410] : memref<176xf32, #tpu.memory_space<smem>>
    %c9_i32_153 = arith.constant 9 : i32
    %412 = arith.addi %332, %c9_i32_153 : i32
    %c6_i32_154 = arith.constant 6 : i32
    %413 = arith.addi %412, %c6_i32_154 : i32
    %c2_i32_155 = arith.constant 2 : i32
    %414 = arith.addi %413, %c2_i32_155 : i32
    %415 = arith.index_cast %414 : i32 to index
    %416 = memref.load %arg2[%415] : memref<176xf32, #tpu.memory_space<smem>>
    %c18_i32_156 = arith.constant 18 : i32
    %417 = arith.addi %332, %c18_i32_156 : i32
    %c0_i32_157 = arith.constant 0 : i32
    %418 = arith.addi %417, %c0_i32_157 : i32
    %419 = arith.index_cast %418 : i32 to index
    %420 = memref.load %arg2[%419] : memref<176xf32, #tpu.memory_space<smem>>
    %c18_i32_158 = arith.constant 18 : i32
    %421 = arith.addi %332, %c18_i32_158 : i32
    %c1_i32_159 = arith.constant 1 : i32
    %422 = arith.addi %421, %c1_i32_159 : i32
    %423 = arith.index_cast %422 : i32 to index
    %424 = memref.load %arg2[%423] : memref<176xf32, #tpu.memory_space<smem>>
    %c18_i32_160 = arith.constant 18 : i32
    %425 = arith.addi %332, %c18_i32_160 : i32
    %c2_i32_161 = arith.constant 2 : i32
    %426 = arith.addi %425, %c2_i32_161 : i32
    %427 = arith.index_cast %426 : i32 to index
    %428 = memref.load %arg2[%427] : memref<176xf32, #tpu.memory_space<smem>>
    %c21_i32_162 = arith.constant 21 : i32
    %429 = arith.addi %332, %c21_i32_162 : i32
    %c0_i32_163 = arith.constant 0 : i32
    %430 = arith.addi %429, %c0_i32_163 : i32
    %431 = arith.index_cast %430 : i32 to index
    %432 = memref.load %arg2[%431] : memref<176xf32, #tpu.memory_space<smem>>
    %c21_i32_164 = arith.constant 21 : i32
    %433 = arith.addi %332, %c21_i32_164 : i32
    %c1_i32_165 = arith.constant 1 : i32
    %434 = arith.addi %433, %c1_i32_165 : i32
    %435 = arith.index_cast %434 : i32 to index
    %436 = memref.load %arg2[%435] : memref<176xf32, #tpu.memory_space<smem>>
    %c21_i32_166 = arith.constant 21 : i32
    %437 = arith.addi %332, %c21_i32_166 : i32
    %c2_i32_167 = arith.constant 2 : i32
    %438 = arith.addi %437, %c2_i32_167 : i32
    %439 = arith.index_cast %438 : i32 to index
    %440 = memref.load %arg2[%439] : memref<176xf32, #tpu.memory_space<smem>>
    %c24_i32_168 = arith.constant 24 : i32
    %441 = arith.addi %332, %c24_i32_168 : i32
    %c0_i32_169 = arith.constant 0 : i32
    %442 = arith.addi %441, %c0_i32_169 : i32
    %c0_i32_170 = arith.constant 0 : i32
    %443 = arith.addi %442, %c0_i32_170 : i32
    %444 = arith.index_cast %443 : i32 to index
    %445 = memref.load %arg2[%444] : memref<176xf32, #tpu.memory_space<smem>>
    %c24_i32_171 = arith.constant 24 : i32
    %446 = arith.addi %332, %c24_i32_171 : i32
    %c0_i32_172 = arith.constant 0 : i32
    %447 = arith.addi %446, %c0_i32_172 : i32
    %c1_i32_173 = arith.constant 1 : i32
    %448 = arith.addi %447, %c1_i32_173 : i32
    %449 = arith.index_cast %448 : i32 to index
    %450 = memref.load %arg2[%449] : memref<176xf32, #tpu.memory_space<smem>>
    %c24_i32_174 = arith.constant 24 : i32
    %451 = arith.addi %332, %c24_i32_174 : i32
    %c0_i32_175 = arith.constant 0 : i32
    %452 = arith.addi %451, %c0_i32_175 : i32
    %c2_i32_176 = arith.constant 2 : i32
    %453 = arith.addi %452, %c2_i32_176 : i32
    %454 = arith.index_cast %453 : i32 to index
    %455 = memref.load %arg2[%454] : memref<176xf32, #tpu.memory_space<smem>>
    %c24_i32_177 = arith.constant 24 : i32
    %456 = arith.addi %332, %c24_i32_177 : i32
    %c3_i32_178 = arith.constant 3 : i32
    %457 = arith.addi %456, %c3_i32_178 : i32
    %c0_i32_179 = arith.constant 0 : i32
    %458 = arith.addi %457, %c0_i32_179 : i32
    %459 = arith.index_cast %458 : i32 to index
    %460 = memref.load %arg2[%459] : memref<176xf32, #tpu.memory_space<smem>>
    %c24_i32_180 = arith.constant 24 : i32
    %461 = arith.addi %332, %c24_i32_180 : i32
    %c3_i32_181 = arith.constant 3 : i32
    %462 = arith.addi %461, %c3_i32_181 : i32
    %c1_i32_182 = arith.constant 1 : i32
    %463 = arith.addi %462, %c1_i32_182 : i32
    %464 = arith.index_cast %463 : i32 to index
    %465 = memref.load %arg2[%464] : memref<176xf32, #tpu.memory_space<smem>>
    %c24_i32_183 = arith.constant 24 : i32
    %466 = arith.addi %332, %c24_i32_183 : i32
    %c3_i32_184 = arith.constant 3 : i32
    %467 = arith.addi %466, %c3_i32_184 : i32
    %c2_i32_185 = arith.constant 2 : i32
    %468 = arith.addi %467, %c2_i32_185 : i32
    %469 = arith.index_cast %468 : i32 to index
    %470 = memref.load %arg2[%469] : memref<176xf32, #tpu.memory_space<smem>>
    %c24_i32_186 = arith.constant 24 : i32
    %471 = arith.addi %332, %c24_i32_186 : i32
    %c6_i32_187 = arith.constant 6 : i32
    %472 = arith.addi %471, %c6_i32_187 : i32
    %c0_i32_188 = arith.constant 0 : i32
    %473 = arith.addi %472, %c0_i32_188 : i32
    %474 = arith.index_cast %473 : i32 to index
    %475 = memref.load %arg2[%474] : memref<176xf32, #tpu.memory_space<smem>>
    %c24_i32_189 = arith.constant 24 : i32
    %476 = arith.addi %332, %c24_i32_189 : i32
    %c6_i32_190 = arith.constant 6 : i32
    %477 = arith.addi %476, %c6_i32_190 : i32
    %c1_i32_191 = arith.constant 1 : i32
    %478 = arith.addi %477, %c1_i32_191 : i32
    %479 = arith.index_cast %478 : i32 to index
    %480 = memref.load %arg2[%479] : memref<176xf32, #tpu.memory_space<smem>>
    %c24_i32_192 = arith.constant 24 : i32
    %481 = arith.addi %332, %c24_i32_192 : i32
    %c6_i32_193 = arith.constant 6 : i32
    %482 = arith.addi %481, %c6_i32_193 : i32
    %c2_i32_194 = arith.constant 2 : i32
    %483 = arith.addi %482, %c2_i32_194 : i32
    %484 = arith.index_cast %483 : i32 to index
    %485 = memref.load %arg2[%484] : memref<176xf32, #tpu.memory_space<smem>>
    %c33_i32_195 = arith.constant 33 : i32
    %486 = arith.addi %332, %c33_i32_195 : i32
    %c0_i32_196 = arith.constant 0 : i32
    %487 = arith.addi %486, %c0_i32_196 : i32
    %488 = arith.index_cast %487 : i32 to index
    %489 = memref.load %arg2[%488] : memref<176xf32, #tpu.memory_space<smem>>
    %c33_i32_197 = arith.constant 33 : i32
    %490 = arith.addi %332, %c33_i32_197 : i32
    %c1_i32_198 = arith.constant 1 : i32
    %491 = arith.addi %490, %c1_i32_198 : i32
    %492 = arith.index_cast %491 : i32 to index
    %493 = memref.load %arg2[%492] : memref<176xf32, #tpu.memory_space<smem>>
    %c33_i32_199 = arith.constant 33 : i32
    %494 = arith.addi %332, %c33_i32_199 : i32
    %c2_i32_200 = arith.constant 2 : i32
    %495 = arith.addi %494, %c2_i32_200 : i32
    %496 = arith.index_cast %495 : i32 to index
    %497 = memref.load %arg2[%496] : memref<176xf32, #tpu.memory_space<smem>>
    %c36_i32_201 = arith.constant 36 : i32
    %498 = arith.addi %332, %c36_i32_201 : i32
    %c0_i32_202 = arith.constant 0 : i32
    %499 = arith.addi %498, %c0_i32_202 : i32
    %500 = arith.index_cast %499 : i32 to index
    %501 = memref.load %arg2[%500] : memref<176xf32, #tpu.memory_space<smem>>
    %c36_i32_203 = arith.constant 36 : i32
    %502 = arith.addi %332, %c36_i32_203 : i32
    %c1_i32_204 = arith.constant 1 : i32
    %503 = arith.addi %502, %c1_i32_204 : i32
    %504 = arith.index_cast %503 : i32 to index
    %505 = memref.load %arg2[%504] : memref<176xf32, #tpu.memory_space<smem>>
    %c36_i32_205 = arith.constant 36 : i32
    %506 = arith.addi %332, %c36_i32_205 : i32
    %c2_i32_206 = arith.constant 2 : i32
    %507 = arith.addi %506, %c2_i32_206 : i32
    %508 = arith.index_cast %507 : i32 to index
    %509 = memref.load %arg2[%508] : memref<176xf32, #tpu.memory_space<smem>>
    %c39_i32_207 = arith.constant 39 : i32
    %510 = arith.addi %332, %c39_i32_207 : i32
    %c0_i32_208 = arith.constant 0 : i32
    %511 = arith.addi %510, %c0_i32_208 : i32
    %c0_i32_209 = arith.constant 0 : i32
    %512 = arith.addi %511, %c0_i32_209 : i32
    %513 = arith.index_cast %512 : i32 to index
    %514 = memref.load %arg2[%513] : memref<176xf32, #tpu.memory_space<smem>>
    %c39_i32_210 = arith.constant 39 : i32
    %515 = arith.addi %332, %c39_i32_210 : i32
    %c0_i32_211 = arith.constant 0 : i32
    %516 = arith.addi %515, %c0_i32_211 : i32
    %c1_i32_212 = arith.constant 1 : i32
    %517 = arith.addi %516, %c1_i32_212 : i32
    %518 = arith.index_cast %517 : i32 to index
    %519 = memref.load %arg2[%518] : memref<176xf32, #tpu.memory_space<smem>>
    %c39_i32_213 = arith.constant 39 : i32
    %520 = arith.addi %332, %c39_i32_213 : i32
    %c0_i32_214 = arith.constant 0 : i32
    %521 = arith.addi %520, %c0_i32_214 : i32
    %c2_i32_215 = arith.constant 2 : i32
    %522 = arith.addi %521, %c2_i32_215 : i32
    %523 = arith.index_cast %522 : i32 to index
    %524 = memref.load %arg2[%523] : memref<176xf32, #tpu.memory_space<smem>>
    %c42_i32_216 = arith.constant 42 : i32
    %525 = arith.addi %332, %c42_i32_216 : i32
    %c0_i32_217 = arith.constant 0 : i32
    %526 = arith.addi %525, %c0_i32_217 : i32
    %527 = arith.index_cast %526 : i32 to index
    %528 = memref.load %arg2[%527] : memref<176xf32, #tpu.memory_space<smem>>
    %c43_i32_218 = arith.constant 43 : i32
    %529 = arith.addi %332, %c43_i32_218 : i32
    %c0_i32_219 = arith.constant 0 : i32
    %530 = arith.addi %529, %c0_i32_219 : i32
    %531 = arith.index_cast %530 : i32 to index
    %532 = memref.load %arg2[%531] : memref<176xf32, #tpu.memory_space<smem>>
    %c1 = arith.constant 1 : index
    %c0_220 = arith.constant 0 : index
    %c0_221 = arith.constant 0 : index
    %533 = vector.load %arg3[%c1, %c0_220, %c0_221] : memref<2x32x128xf32, #tpu.memory_space<vmem>>, vector<1x32x128xf32>
    %534 = vector.shape_cast %533 : vector<1x32x128xf32> to vector<32x128xf32>
    %535 = vector.broadcast %337 : f32 to vector<32x128xf32>
    %536 = arith.mulf %534, %535 : vector<32x128xf32>
    %537 = vector.broadcast %363 : f32 to vector<32x128xf32>
    %538 = arith.addf %536, %537 : vector<32x128xf32>
    %539 = math.tanh %538 : vector<32x128xf32>
    %540 = vector.broadcast %351 : f32 to vector<32x128xf32>
    %541 = arith.mulf %540, %539 : vector<32x128xf32>
    %542 = arith.addf %538, %541 : vector<32x128xf32>
    %543 = vector.broadcast %342 : f32 to vector<32x128xf32>
    %544 = arith.mulf %534, %543 : vector<32x128xf32>
    %545 = vector.broadcast %367 : f32 to vector<32x128xf32>
    %546 = arith.addf %544, %545 : vector<32x128xf32>
    %547 = math.tanh %546 : vector<32x128xf32>
    %548 = vector.broadcast %355 : f32 to vector<32x128xf32>
    %549 = arith.mulf %548, %547 : vector<32x128xf32>
    %550 = arith.addf %546, %549 : vector<32x128xf32>
    %551 = vector.broadcast %347 : f32 to vector<32x128xf32>
    %552 = arith.mulf %534, %551 : vector<32x128xf32>
    %553 = vector.broadcast %371 : f32 to vector<32x128xf32>
    %554 = arith.addf %552, %553 : vector<32x128xf32>
    %555 = math.tanh %554 : vector<32x128xf32>
    %556 = vector.broadcast %359 : f32 to vector<32x128xf32>
    %557 = arith.mulf %556, %555 : vector<32x128xf32>
    %558 = arith.addf %554, %557 : vector<32x128xf32>
    %559 = vector.broadcast %376 : f32 to vector<32x128xf32>
    %560 = arith.mulf %542, %559 : vector<32x128xf32>
    %561 = vector.broadcast %381 : f32 to vector<32x128xf32>
    %562 = arith.mulf %550, %561 : vector<32x128xf32>
    %563 = arith.addf %560, %562 : vector<32x128xf32>
    %564 = vector.broadcast %386 : f32 to vector<32x128xf32>
    %565 = arith.mulf %558, %564 : vector<32x128xf32>
    %566 = arith.addf %563, %565 : vector<32x128xf32>
    %567 = vector.broadcast %432 : f32 to vector<32x128xf32>
    %568 = arith.addf %566, %567 : vector<32x128xf32>
    %569 = math.tanh %568 : vector<32x128xf32>
    %570 = vector.broadcast %420 : f32 to vector<32x128xf32>
    %571 = arith.mulf %570, %569 : vector<32x128xf32>
    %572 = arith.addf %568, %571 : vector<32x128xf32>
    %573 = vector.broadcast %391 : f32 to vector<32x128xf32>
    %574 = arith.mulf %542, %573 : vector<32x128xf32>
    %575 = vector.broadcast %396 : f32 to vector<32x128xf32>
    %576 = arith.mulf %550, %575 : vector<32x128xf32>
    %577 = arith.addf %574, %576 : vector<32x128xf32>
    %578 = vector.broadcast %401 : f32 to vector<32x128xf32>
    %579 = arith.mulf %558, %578 : vector<32x128xf32>
    %580 = arith.addf %577, %579 : vector<32x128xf32>
    %581 = vector.broadcast %436 : f32 to vector<32x128xf32>
    %582 = arith.addf %580, %581 : vector<32x128xf32>
    %583 = math.tanh %582 : vector<32x128xf32>
    %584 = vector.broadcast %424 : f32 to vector<32x128xf32>
    %585 = arith.mulf %584, %583 : vector<32x128xf32>
    %586 = arith.addf %582, %585 : vector<32x128xf32>
    %587 = vector.broadcast %406 : f32 to vector<32x128xf32>
    %588 = arith.mulf %542, %587 : vector<32x128xf32>
    %589 = vector.broadcast %411 : f32 to vector<32x128xf32>
    %590 = arith.mulf %550, %589 : vector<32x128xf32>
    %591 = arith.addf %588, %590 : vector<32x128xf32>
    %592 = vector.broadcast %416 : f32 to vector<32x128xf32>
    %593 = arith.mulf %558, %592 : vector<32x128xf32>
    %594 = arith.addf %591, %593 : vector<32x128xf32>
    %595 = vector.broadcast %440 : f32 to vector<32x128xf32>
    %596 = arith.addf %594, %595 : vector<32x128xf32>
    %597 = math.tanh %596 : vector<32x128xf32>
    %598 = vector.broadcast %428 : f32 to vector<32x128xf32>
    %599 = arith.mulf %598, %597 : vector<32x128xf32>
    %600 = arith.addf %596, %599 : vector<32x128xf32>
    %601 = vector.broadcast %445 : f32 to vector<32x128xf32>
    %602 = arith.mulf %572, %601 : vector<32x128xf32>
    %603 = vector.broadcast %450 : f32 to vector<32x128xf32>
    %604 = arith.mulf %586, %603 : vector<32x128xf32>
    %605 = arith.addf %602, %604 : vector<32x128xf32>
    %606 = vector.broadcast %455 : f32 to vector<32x128xf32>
    %607 = arith.mulf %600, %606 : vector<32x128xf32>
    %608 = arith.addf %605, %607 : vector<32x128xf32>
    %609 = vector.broadcast %501 : f32 to vector<32x128xf32>
    %610 = arith.addf %608, %609 : vector<32x128xf32>
    %611 = math.tanh %610 : vector<32x128xf32>
    %612 = vector.broadcast %489 : f32 to vector<32x128xf32>
    %613 = arith.mulf %612, %611 : vector<32x128xf32>
    %614 = arith.addf %610, %613 : vector<32x128xf32>
    %615 = vector.broadcast %460 : f32 to vector<32x128xf32>
    %616 = arith.mulf %572, %615 : vector<32x128xf32>
    %617 = vector.broadcast %465 : f32 to vector<32x128xf32>
    %618 = arith.mulf %586, %617 : vector<32x128xf32>
    %619 = arith.addf %616, %618 : vector<32x128xf32>
    %620 = vector.broadcast %470 : f32 to vector<32x128xf32>
    %621 = arith.mulf %600, %620 : vector<32x128xf32>
    %622 = arith.addf %619, %621 : vector<32x128xf32>
    %623 = vector.broadcast %505 : f32 to vector<32x128xf32>
    %624 = arith.addf %622, %623 : vector<32x128xf32>
    %625 = math.tanh %624 : vector<32x128xf32>
    %626 = vector.broadcast %493 : f32 to vector<32x128xf32>
    %627 = arith.mulf %626, %625 : vector<32x128xf32>
    %628 = arith.addf %624, %627 : vector<32x128xf32>
    %629 = vector.broadcast %475 : f32 to vector<32x128xf32>
    %630 = arith.mulf %572, %629 : vector<32x128xf32>
    %631 = vector.broadcast %480 : f32 to vector<32x128xf32>
    %632 = arith.mulf %586, %631 : vector<32x128xf32>
    %633 = arith.addf %630, %632 : vector<32x128xf32>
    %634 = vector.broadcast %485 : f32 to vector<32x128xf32>
    %635 = arith.mulf %600, %634 : vector<32x128xf32>
    %636 = arith.addf %633, %635 : vector<32x128xf32>
    %637 = vector.broadcast %509 : f32 to vector<32x128xf32>
    %638 = arith.addf %636, %637 : vector<32x128xf32>
    %639 = math.tanh %638 : vector<32x128xf32>
    %640 = vector.broadcast %497 : f32 to vector<32x128xf32>
    %641 = arith.mulf %640, %639 : vector<32x128xf32>
    %642 = arith.addf %638, %641 : vector<32x128xf32>
    %643 = vector.broadcast %514 : f32 to vector<32x128xf32>
    %644 = arith.mulf %614, %643 : vector<32x128xf32>
    %645 = vector.broadcast %519 : f32 to vector<32x128xf32>
    %646 = arith.mulf %628, %645 : vector<32x128xf32>
    %647 = arith.addf %644, %646 : vector<32x128xf32>
    %648 = vector.broadcast %524 : f32 to vector<32x128xf32>
    %649 = arith.mulf %642, %648 : vector<32x128xf32>
    %650 = arith.addf %647, %649 : vector<32x128xf32>
    %651 = vector.broadcast %532 : f32 to vector<32x128xf32>
    %652 = arith.addf %650, %651 : vector<32x128xf32>
    %653 = math.tanh %652 : vector<32x128xf32>
    %654 = vector.broadcast %528 : f32 to vector<32x128xf32>
    %655 = arith.mulf %654, %653 : vector<32x128xf32>
    %656 = arith.addf %652, %655 : vector<32x128xf32>
    %c1_222 = arith.constant 1 : index
    %c0_223 = arith.constant 0 : index
    %c0_224 = arith.constant 0 : index
    %657 = vector.load %arg4[%c1_222, %c0_223, %c0_224] : memref<2x32x128xf32, #tpu.memory_space<vmem>>, vector<1x32x128xf32>
    %658 = vector.shape_cast %657 : vector<1x32x128xf32> to vector<32x128xf32>
    %659 = vector.shape_cast %656 : vector<32x128xf32> to vector<1x32x128xf32>
    tpu.vector_store %arg4[%c1_222, %c0_223, %c0_224], %659 {strides = array<i32>} : memref<2x32x128xf32, #tpu.memory_space<vmem>>, vector<1x32x128xf32>,
    return
  }
  func.func @transform_0(%arg0: i32, %arg1: i32, %arg2: memref<176xf32, #tpu.memory_space<smem>>) -> (i32, i32, i32) {
    %c0_i32 = arith.constant 0 : i32
    %c0_i32_0 = arith.constant 0 : i32
    return %arg0, %arg1, %c0_i32 : i32, i32, i32
  }
  func.func @transform_1(%arg0: i32, %arg1: i32, %arg2: memref<176xf32, #tpu.memory_space<smem>>) -> (i32, i32, i32) {
    %c0_i32 = arith.constant 0 : i32
    %c0_i32_0 = arith.constant 0 : i32
    return %arg0, %arg1, %c0_i32 : i32, i32, i32
  }
}

</mosaic_0001>

<bundles_post_ra>
// kernel: tpu_custom_call.1
= control target key start
LH: loop header
LB: loop body
LE: loop exit
PB: predicated region body
PF: predicated region fallthrough
CT: control target
= control target key end

     0   :  { %s1552_s9 = smov [#allocation3]   ;;  %s2771_s0 = inlined_call_operand.hbm [shape: f32[176], index: 0, kind: input, shape index: {}]   ;;  %s2772_s1 = inlined_call_operand.hbm [shape: f32[4,32,128], index: 1, kind: input, shape index: {}]   ;;  %s2773_s2 = inlined_call_operand.hbm [shape: f32[4,32,128], index: 2, kind: output, shape index: {}]  }
   0x1   :  { %2781 = sst [smem:[#allocation17_spill]] %s2772_s1 }
   0x2   :  { %8 = dma.hbm_to_smem %s2771_s0, 32, %s1552_s9, [#allocation2] }
   0x3   :  { %1518 = dma.done.wait [#allocation2], 32 }
   0x4   :  { %1519 = vsyncadd [#allocation2], 4294967264 }
   0x5   :  { %10 = sfence }
   0x6   :  { %11 = vsyncpa [#allocation5], 0 }
   0x7   :  { %13 = vsyncpa [#allocation5 + $0x1], 0 }
   0x8   :  { %14 = vsyncpa [#allocation6], 0 }
   0x9   :  { %16 = vsyncpa [#allocation6 + $0x1], 0  ;;  %s1577_s12 = smov 0   ;;  %s1579_s13 = smov 0  }
   0xa   :  { %s1581_s14 = smov 0   ;;  %s1583_s15 = smov 0  }
   0xb   :  { %s1585_s16 = smov 0   ;;  %s1587_s17 = smov 0  }
   0xc LB: > { %2782 = sst [smem:[#allocation11_spill]] %s1534_s13  ;;  %s1175_s0 = sadd.s32 4294967295, %s1550_s17   ;;  %s1550_s17 = sphi %s1587_s17, %s22_s17   ;;  %s1546_s16 = sphi %s1585_s16, %s2801_s16   ;;  %s1542_s15 = sphi %s1583_s15, %s2800_s15   ;;  %s1538_s14 = sphi %s1581_s14, %s2799_s14   ;;  %s1534_s13 = sphi %s1579_s13, %s2798_s13   ;;  %s1530_s12 = sphi %s1577_s12, %s2797_s12  }
   0xd   : > { %2783 = sst [smem:[#allocation12_spill]] %s1538_s14  ;;  %s1176_s18 = sadd.s32 4294967294, %s1550_s17  }
   0xe   : > { %2784 = sst [smem:[#allocation13_spill]] %s1546_s16  ;;  %s34_s19 = sadd.s32 1, %s1546_s16 }
   0xf   : > { %2785 = sst [smem:[#allocation14_spill]] %s1550_s17  ;;  %s43_s20 = sadd.s32 1, %s1538_s14 }
  0x10   : > { %p36_p0 = scmp.ge.s32.totalorder %s34_s19, 2  ;;  %p50_p1 = scmp.ne.s32.totalorder %s1538_s14, %s1534_s13 }
  0x11   : > { %p51_p2 = scmp.eq.s32.totalorder %s1550_s17, 0  ;;  %p56_p3 = scmp.ne.s32.totalorder %s1534_s13, %s1530_s12 }
  0x12   : > { %s2803_s19 = smov (%p36_p0, %s34_s19), 0  ;;  %p57_p5 = scmp.eq.s32.totalorder %s1175_s0, 0 }
  0x13   : > { %2786 = sst [smem:[#allocation15_spill]] %s2803_s19  ;;  %p1618_p4 = por %p51_p2, %p50_p1 }
  0x14   : > { %s38_s22 = ssub.s32 %s1546_s16, %s2803_s19  ;;  %p82_p6 = scmp.eq.s32.totalorder %s1175_s0, 1 }
  0x15   : > { %p41_p7 = scmp.eq.s32.totalorder %s38_s22, 0  ;;  %p1624_p8 = por %p57_p5, %p56_p3 }
  0x16   : > { %p1628_p9 = por %p82_p6, %p50_p1  ;;  %p88_p10 = scmp.eq.s32.totalorder %s1176_s18, 1 }
  0x17   : > { %s1633_s25 = scalar_select %p41_p7, %s1538_s14, %s43_s20  }
  0x18   : > { %p1635_p11 = por %p88_p10, %p56_p3  ;;  %p1217_p13 = scmp.lt.s32.totalorder %s1550_s17, 2 }
  0x19   : > { %2790 = sst [smem:[#allocation16_spill]] %s1633_s25  ;;  %s108_s27 = sand.u32 1, %s1538_s14  }
  0x1a   : > { %s1179_s28 = sshll.u32 %s108_s27, 6  ;;  %s1202_s29 = sshll.u32 %s1546_s16, 10 }
  0x1b   : > { %s2792_s1 = sld [smem:[#allocation17_spill]]  ;;  %s112_s5 = scalar_lea.vmem [#allocation4], %s1179_s28 }
  0x1c   : > { %s122_s6 = sshll.u32 %s112_s5, 4  ;;  %p1648_p0 = pnand %p1217_p13, %p1618_p4  ;;  %s123_s6 = int_to_ptr.vmem [resolvable:$true] %s122_s6 }
  0x1d   : > { %p1183_p1 = scmp.ge.s32.totalorder %s1550_s17, 1  ;;  %s109_s8 = scalar_lea.sflag [#allocation5], %s108_s27 }
  0x1e   : > { %p1442_p2 = pneg %p1648_p0  ;;  %s1453_s9 = scalar_lea.vmem %s123_s6, 1024 }
  0x1f   : > { %p1454_p3 = scmp.ne.s32.totalorder %s123_s6, %s1453_s9  ;;  %s1553_s10 = smov [#allocation4]  }
  0x20   : > { %s1458_s11 = sshll.u32 %s1553_s10, 4  ;;  %s1459_s11 = int_to_ptr.vmem [resolvable:$false] %s1458_s11 }
  0x21   : > { %s121_s4 = scalar_lea.hbm %s2792_s1, %s1202_s29  ;;  %p1456_p5 = pnand %p1454_p3, %p1442_p2 }
  0x22   : > { %s1460_s0 = scalar_lea.vmem %s1459_s11, 2048  ;;  %p1461_p7 = scmp.lt.s32.totalorder %s123_s6, %s1459_s11 }
  0x23   : > { %p1457_p6 = pneg %p1456_p5  ;;  %p1462_p10 = scmp.lt.s32.totalorder %s1460_s0, %s1453_s9 }
  0x25   : > { %p1463_p12 = por %p1462_p10, %p1461_p7 }
  0x27   : > { %p1464_p4 = pnand %p1463_p12, %p1457_p6 }
  0x29   : > { %1467 = shalt.err (!%p1464_p4)
}
  0x2a   : > { %s1554_s18 = smov 128   ;;  %s1555_s20 = smov 8  }
  0x2b   : > { %1212 = dma.hbm_to_vmem [thread:$0]  (!%p1648_p0), %s121_s4, 1024, %s123_s6, %s109_s8, %s1554_s18, %s1554_s18, %s1555_s20  }
  0x2c   : > { %p130_p13 = scmp.lt.s32.totalorder %s1550_s17, 3 }
  0x2e   : > { %p131_p2 = pnand %p1183_p1, %p130_p13 }
  0x2f   : > { %s1661_s21 = sand.u32 (!%p131_p2), 1, %s1534_s13  }
  0x30   : > { %134 = sbr.rel (%p131_p2) target bundleno = 295 (0x127), region = 24  ;;  %s2774_s22 = sshll.u32 (!%p131_p2), %s1661_s21, 6 }
  0x31   : > { %s137_s27 = scalar_lea.sflag (!%p131_p2), [#allocation5], %s1661_s21  ;;  %s1667_s28 = scalar_lea.vmem (!%p131_p2), [#allocation4], %s2774_s22 }
  0x35   : > { %1521 = dma.done.wait (%p1624_p8), %s137_s27, 1024  }
  0x36   : > { %1523 = vsyncadd (%p1624_p8), %s137_s27, 4294966272  ;;  %s1674_s29 = smul.u32 88, %s1542_s15  ;;  %v251_v0 = vld [vmem:[%s1667_s28] sm:$0xff]  ;;  %v252_v1 = vld [vmem:[%s1667_s28 + $0x8] sm:$0xff] }
  0x37   : > { %v253_v2 = vld [vmem:[%s1667_s28 + $0x10] sm:$0xff]  ;;  %v254_v4 = vld [vmem:[%s1667_s28 + $0x18] sm:$0xff] }
  0x38   : > { %s164_s30 = sld [smem:[#allocation3 + %s1674_s29]]  ;;  %s165_s3 = sadd.s32 1, %s1674_s29 }
  0x39   : > { %s166_s4 = sld [smem:[#allocation3 + %s165_s3]]  ;;  %s167_s5 = sadd.s32 2, %s1674_s29 }
  0x3a   : > { %s1679_s23 = sld [smem:[#allocation3 + %s167_s5]]  ;;  %s169_s6 = sadd.s32 3, %s1674_s29 }
  0x3b   : > { %s1682_s7 = sld [smem:[#allocation3 + %s169_s6]]  ;;  %s171_s8 = sadd.s32 4, %s1674_s29 }
  0x3c   : > { %s1685_s9 = sld [smem:[#allocation3 + %s171_s8]]  ;;  %s173_s10 = sadd.s32 5, %s1674_s29 }
  0x3d   : > { %s1688_s11 = sld [smem:[#allocation3 + %s173_s10]]  ;;  %s175_s0 = sadd.s32 6, %s1674_s29 }
  0x3e   : > { %s176_s18 = sld [smem:[#allocation3 + %s175_s0]]  ;;  %s177_s20 = sadd.s32 7, %s1674_s29  ;;  %v255_v3 = vstv %s164_s30 }
  0x3f   : > { %s1695_s27 = sld [smem:[#allocation3 + %s177_s20]]  ;;  %s179_s3 = sadd.s32 8, %s1674_s29  ;;  %v278_v5 = vstv %s166_s4  ;;  %v256_v6 = vmul.f32 %v255_v3, %v251_v0  ;;  %v257_v7 = vmul.f32 %v255_v3, %v252_v1  ;;  %v258_v8 = vmul.f32 %v255_v3, %v253_v2 }
  0x40   : > { %s1699_s5 = sld [smem:[#allocation3 + %s179_s3]]  ;;  %s181_s6 = sadd.s32 9, %s1674_s29  ;;  %v259_v9 = vmul.f32 %v255_v3, %v254_v4  ;;  %v279_v10 = vmul.f32 %v278_v5, %v251_v0  ;;  %v280_v12 = vmul.f32 %v278_v5, %v252_v1  ;;  %v301_v13 = vstv %s1679_s23 }
  0x41   : > { %s1702_s8 = sld [smem:[#allocation3 + %s181_s6]]  ;;  %s183_s10 = sadd.s32 10, %s1674_s29  ;;  %v281_v17 = vmul.f32 %v278_v5, %v253_v2  ;;  %v282_v19 = vmul.f32 %v278_v5, %v254_v4  ;;  %v302_v22 = vmul.f32 %v301_v13, %v251_v0  ;;  %v303_v24 = vmul.f32 %v301_v13, %v252_v1 }
  0x42   : > { %s1705_s0 = sld [smem:[#allocation3 + %s183_s10]]  ;;  %s185_s30 = sadd.s32 11, %s1674_s29  ;;  %v304_v27 = vmul.f32 %v301_v13, %v253_v2  ;;  %v305_v29 = vmul.f32 %v301_v13, %v254_v4  ;;  %v269_v34 = vstv %s1682_s7  ;;  %v292_v35 = vstv %s1685_s9 }
  0x43   : > { %s1708_s20 = sld [smem:[#allocation3 + %s185_s30]]  ;;  %s187_s22 = sadd.s32 12, %s1674_s29  ;;  %v1794_v36 = vstv %s1688_s11 }
  0x44   : > { %s1711_s3 = sld [smem:[#allocation3 + %s187_s22]]  ;;  %s189_s4 = sadd.s32 13, %s1674_s29  ;;  %v260_v11 = vstv %s176_s18 }
  0x45   : > { %s1715_s6 = sld [smem:[#allocation3 + %s189_s4]]  ;;  %s191_s1 = sadd.s32 14, %s1674_s29  ;;  %v1718_v14 = vadd.f32 %v260_v11, %v256_v6  ;;  %v1720_v15 = vadd.f32 %v260_v11, %v257_v7  ;;  %v1722_v16 = vadd.f32 %v260_v11, %v258_v8  ;;  %v1727_v18 = vadd.f32 %v260_v11, %v259_v9 }
  0x46   : > { %s1724_s10 = sld [smem:[#allocation3 + %s191_s1]]  ;;  %s193_s22 = sadd.s32 15, %s1674_s29  ;;  %v283_v20 = vstv %s1695_s27  ;;  %v306_v25 = vstv %s1699_s5 }
  0x47   : > { %s1730_s23 = sld [smem:[#allocation3 + %s193_s22]]  ;;  %s195_s18 = sadd.s32 16, %s1674_s29  ;;  %1272 = vtanh.f32 %v1718_v14  ;;  %v1734_v21 = vadd.f32 %v283_v20, %v279_v10  ;;  %v1740_v23 = vadd.f32 %v283_v20, %v280_v12  ;;  %v1747_v26 = vadd.f32 %v283_v20, %v281_v17 }
  0x48   : > { %s1736_s30 = sld [smem:[#allocation3 + %s195_s18]]  ;;  %s197_s4 = sadd.s32 17, %s1674_s29  ;;  %1274 = vtanh.f32 %v1720_v15  ;;  %v1753_v28 = vadd.f32 %v283_v20, %v282_v19  ;;  %v1759_v30 = vadd.f32 %v306_v25, %v302_v22  ;;  %v1765_v31 = vadd.f32 %v306_v25, %v303_v24 }
  0x49   : > { %s1743_s1 = sld [smem:[#allocation3 + %s197_s4]]  ;;  %s199_s27 = sadd.s32 18, %s1674_s29  ;;  %1276 = vtanh.f32 %v1722_v16  ;;  %v1771_v32 = vadd.f32 %v306_v25, %v304_v27  ;;  %v1777_v33 = vadd.f32 %v306_v25, %v305_v29  ;;  %v324_v37 = vstv %s1702_s8 }
  0x4a   : > { %s1749_s22 = sld [smem:[#allocation3 + %s199_s27]]  ;;  %s201_s18 = sadd.s32 19, %s1674_s29  ;;  %1278 = vtanh.f32 %v1727_v18  ;;  %v1798_v38 = vstv %s1705_s0  ;;  %v1801_v39 = vstv %s1708_s20  ;;  %v365_v41 = vstv %s1711_s3 }
  0x4b   : > { %s1755_s5 = sld [smem:[#allocation3 + %s201_s18]]  ;;  %s203_s4 = sadd.s32 20, %s1674_s29  ;;  %1280 = vtanh.f32 %v1734_v21  ;;  %v1805_v42 = vstv %s1715_s6 }
  0x4c   : > { %s1761_s19 = sld [smem:[#allocation3 + %s203_s4]]  ;;  %s205_s27 = sadd.s32 21, %s1674_s29  ;;  %1282 = vtanh.f32 %v1740_v23  ;;  %v1808_v43 = vstv %s1724_s10 }
  0x4d   : > { %s1767_s16 = sld [smem:[#allocation3 + %s205_s27]]  ;;  %s207_s25 = sadd.s32 22, %s1674_s29  ;;  %1284 = vtanh.f32 %v1747_v26  ;;  %v1811_v44 = vstv %s1730_s23 }
  0x4e   : > { %s1773_s18 = sld [smem:[#allocation3 + %s207_s25]]  ;;  %s209_s4 = sadd.s32 23, %s1674_s29  ;;  %1286 = vtanh.f32 %v1753_v28  ;;  %v1817_v48 = vstv %s1736_s30 }
  0x4f   : > { %s1779_s27 = sld [smem:[#allocation3 + %s209_s4]]  ;;  %s211_s14 = sadd.s32 24, %s1674_s29  ;;  %1288 = vtanh.f32 %v1759_v30  ;;  %v1820_v49 = vstv %s1743_s1 }
  0x50   : > { %s1783_s13 = sld [smem:[#allocation3 + %s211_s14]]  ;;  %s213_s25 = sadd.s32 25, %s1674_s29  ;;  %1290 = vtanh.f32 %v1765_v31  ;;  %v1814_v47 = vstv %s1749_s22 }
  0x51   : > { %s1787_s17 = sld [smem:[#allocation3 + %s213_s25]]  ;;  %1292 = vtanh.f32 %v1771_v32  ;;  %v1826_v53 = vstv %s1755_s5  ;;  %s215_s14 = sadd.s32 26, %s1674_s29 }
  0x52   : > { %1294 = vtanh.f32 %v1777_v33  ;;  %v1829_v54 = vstv %s1761_s19  ;;  %s1875_s19 = sld [smem:[#allocation3 + %s215_s14]]  ;;  %s221_s7 = sadd.s32 29, %s1674_s29 }
  0x53   : > { %v1823_v52 = vstv %s1767_s16  ;;  %s219_s16 = sadd.s32 28, %s1674_s29  ;;  %s223_s11 = sadd.s32 30, %s1674_s29 }
  0x54   : > { %v1273_v40 = vpop.eup %1272  ;;  %v1835_v58 = vstv %s1773_s18  ;;  %s1897_s8 = sld [smem:[#allocation3 + %s219_s16]]  ;;  %s225_s0 = sadd.s32 31, %s1674_s29 }
  0x55   : > { %v1275_v45 = vpop.eup %1274  ;;  %v270_v46 = vmul.f32 %v1273_v40, %v269_v34  ;;  %v1838_v59 = vstv %s1779_s27  ;;  %s1906_s20 = sld [smem:[#allocation3 + %s221_s7]]  ;;  %s227_s3 = sadd.s32 32, %s1674_s29 }
  0x56   : > { %v1277_v50 = vpop.eup %1276  ;;  %v271_v51 = vmul.f32 %v1275_v45, %v269_v34  ;;  %v1844_v63 = vstv %s1783_s13  ;;  %s217_s13 = sadd.s32 27, %s1674_s29  ;;  %s1915_s6 = sld [smem:[#allocation3 + %s223_s11]] }
  0x57   : > { %v1279_v55 = vpop.eup %1278  ;;  %v272_v56 = vmul.f32 %v1277_v50, %v269_v34  ;;  %v1832_v57 = vadd.f32 %v270_v46, %v1718_v14  ;;  %v1847_v0 = vstv %s1787_s17  ;;  %s1186_s17 = sshll.u32 %s1542_s15, 1  ;;  %s1886_s9 = sld [smem:[#allocation3 + %s217_s13]] }
  0x58   : > { %v1281_v60 = vpop.eup %1280  ;;  %v273_v61 = vmul.f32 %v1279_v55, %v269_v34  ;;  %v1841_v62 = vadd.f32 %v271_v51, %v1720_v15  ;;  %s229_s10 = sadd.s32 33, %s1674_s29  ;;  %s1925_s23 = sld [smem:[#allocation3 + %s225_s0]] }
  0x59   : > { %v1283_v1 = vpop.eup %1282  ;;  %v1850_v2 = vadd.f32 %v272_v56, %v1722_v16  ;;  %v293_v3 = vmul.f32 %v1281_v60, %v292_v35  ;;  %v325_v4 = vmul.f32 %v324_v37, %v1832_v57  ;;  %v1854_v5 = vmul.f32 %v365_v41, %v1832_v57  ;;  %s231_s30 = sadd.s32 34, %s1674_s29  ;;  %s1935_s1 = sld [smem:[#allocation3 + %s227_s3]] }
  0x5a   : > { %v1285_v6 = vpop.eup %1284  ;;  %v1858_v7 = vadd.f32 %v273_v61, %v1727_v18  ;;  %v294_v8 = vmul.f32 %v1283_v1, %v292_v35  ;;  %v326_v9 = vmul.f32 %v324_v37, %v1841_v62  ;;  %v367_v10 = vmul.f32 %v365_v41, %v1841_v62  ;;  %s233_s22 = sadd.s32 35, %s1674_s29  ;;  %s1941_s5 = sld [smem:[#allocation3 + %s229_s10]] }
  0x5b   : > { %v1287_v11 = vpop.eup %1286  ;;  %v295_v12 = vmul.f32 %v1285_v6, %v292_v35  ;;  %v1864_v13 = vadd.f32 %v293_v3, %v1734_v21  ;;  %v327_v14 = vmul.f32 %v324_v37, %v1850_v2  ;;  %v368_v15 = vmul.f32 %v365_v41, %v1850_v2  ;;  %s235_s18 = sadd.s32 36, %s1674_s29  ;;  %s1946_s4 = sld [smem:[#allocation3 + %s231_s30]] }
  0x5c   : > { %v1289_v16 = vpop.eup %1288  ;;  %v296_v17 = vmul.f32 %v1287_v11, %v292_v35  ;;  %v1870_v18 = vadd.f32 %v294_v8, %v1740_v23  ;;  %v328_v19 = vmul.f32 %v324_v37, %v1858_v7  ;;  %v369_v20 = vmul.f32 %v365_v41, %v1858_v7  ;;  %s237_s27 = sadd.s32 37, %s1674_s29  ;;  %s1956_s25 = sld [smem:[#allocation3 + %s233_s22]] }
  0x5d   : > { %v1291_v22 = vpop.eup %1290  ;;  %v1879_v21 = vadd.f32 %v295_v12, %v1747_v26  ;;  %v316_v24 = vmul.f32 %v1289_v16, %v1794_v36  ;;  %v330_v25 = vmul.f32 %v1798_v38, %v1864_v13  ;;  %v371_v23 = vmul.f32 %v1805_v42, %v1864_v13  ;;  %s239_s14 = sadd.s32 38, %s1674_s29  ;;  %s1966_s13 = sld [smem:[#allocation3 + %s235_s18]] }
  0x5e   : > { %v1293_v27 = vpop.eup %1292  ;;  %v1890_v29 = vadd.f32 %v296_v17, %v1753_v28  ;;  %v317_v34 = vmul.f32 %v1291_v22, %v1794_v36  ;;  %v331_v26 = vmul.f32 %v1798_v38, %v1870_v18  ;;  %v372_v35 = vmul.f32 %v1805_v42, %v1870_v18  ;;  %s241_s16 = sadd.s32 39, %s1674_s29  ;;  %s1973_s7 = sld [smem:[#allocation3 + %s237_s27]] }
  0x5f   : > { %v1295_v37 = vpop.eup %1294  ;;  %v318_v40 = vmul.f32 %v1293_v27, %v1794_v36  ;;  %v1902_v41 = vadd.f32 %v316_v24, %v1759_v30  ;;  %v332_v28 = vmul.f32 %v1798_v38, %v1879_v21  ;;  %v334_v45 = vadd.f32 %v330_v25, %v325_v4  ;;  %s616_s11 = sadd.s32 1, %s1186_s17  ;;  %s1981_s0 = sld [smem:[#allocation3 + %s239_s14]] }
  0x60   : > { %v319_v46 = vmul.f32 %v1295_v37, %v1794_v36  ;;  %v1911_v50 = vadd.f32 %v317_v34, %v1765_v31  ;;  %v333_v51 = vmul.f32 %v1798_v38, %v1890_v29  ;;  %v335_v55 = vadd.f32 %v331_v26, %v326_v9  ;;  %s243_s3 = sadd.s32 40, %s1674_s29  ;;  %s1993_s10 = sld [smem:[#allocation3 + %s241_s16]] }
  0x61   : > { %v1919_v30 = vadd.f32 %v318_v40, %v1771_v32  ;;  %v336_v56 = vadd.f32 %v332_v28, %v327_v14  ;;  %v339_v60 = vmul.f32 %v1801_v39, %v1902_v41  ;;  %v373_v31 = vmul.f32 %v1805_v42, %v1879_v21  ;;  %s245_s30 = sadd.s32 41, %s1674_s29  ;;  %s249_s17 = sadd.s32 43, %s1674_s29 }
  0x62   : > { %v1929_v36 = vadd.f32 %v319_v46, %v1777_v33  ;;  %v337_v38 = vadd.f32 %v333_v51, %v328_v19  ;;  %v340_v32 = vmul.f32 %v1801_v39, %v1911_v50  ;;  %v374_v61 = vmul.f32 %v1805_v42, %v1890_v29  ;;  %s2013_s22 = smul.u32 44, %s616_s11  ;;  %s2015_s18 = sld [smem:[#allocation3 + %s243_s3]] }
  0x63   : > { %v341_v1 = vmul.f32 %v1801_v39, %v1919_v30  ;;  %v343_v3 = vadd.f32 %v339_v60, %v334_v45  ;;  %v375_v4 = vadd.f32 %v371_v23, %v1854_v5  ;;  %v376_v33 = vadd.f32 %v372_v35, %v367_v10  ;;  %s2024_s27 = sld [smem:[#allocation3 + %s245_s30]] }
  0x64   : > { %v342_v6 = vmul.f32 %v1801_v39, %v1929_v36  ;;  %v344_v8 = vadd.f32 %v340_v32, %v335_v55  ;;  %v377_v42 = vadd.f32 %v373_v31, %v368_v15  ;;  %v378_v9 = vadd.f32 %v374_v61, %v369_v20  ;;  %s2031_s14 = sld [smem:[#allocation3 + %s249_s17]]  ;;  %s627_s11 = sadd.s32 5, %s2013_s22 }
  0x65   : > { %v345_v11 = vadd.f32 %v341_v1, %v336_v56  ;;  %v1950_v12 = vadd.f32 %v1823_v52, %v343_v3  ;;  %v380_v5 = vmul.f32 %v1808_v43, %v1902_v41  ;;  %v381_v10 = vmul.f32 %v1808_v43, %v1911_v50  ;;  %s2042_s16 = sld [smem:[#allocation3 + %s2013_s22]]  ;;  %s637_s17 = sadd.s32 10, %s2013_s22 }
  0x66   : > { %v346_v39 = vadd.f32 %v342_v6, %v337_v38  ;;  %v1960_v14 = vadd.f32 %v1823_v52, %v344_v8  ;;  %v382_v15 = vmul.f32 %v1808_v43, %v1919_v30  ;;  %v383_v16 = vmul.f32 %v1808_v43, %v1929_v36  ;;  %s2252_s3 = sld [smem:[#allocation3 + %s627_s11]] }
  0x67   : > { %v1970_v17 = vadd.f32 %v1823_v52, %v345_v11  ;;  %1296 = vtanh.f32 %v1950_v12  ;;  %v384_v19 = vadd.f32 %v380_v5, %v375_v4  ;;  %v385_v20 = vadd.f32 %v381_v10, %v376_v33  ;;  %v2098_v11 = vld [vmem:[%s1667_s28 + $0x20] sm:$0xff]  ;;  %v2101_v5 = vld [vmem:[%s1667_s28 + $0x28] sm:$0xff] }
  0x68   : > { %v1976_v22 = vadd.f32 %v1823_v52, %v346_v39  ;;  %1298 = vtanh.f32 %v1960_v14  ;;  %v386_v43 = vadd.f32 %v382_v15, %v377_v42  ;;  %v387_v24 = vadd.f32 %v383_v16, %v378_v9 }
  0x69   : > { %1300 = vtanh.f32 %v1970_v17  ;;  %v1986_v25 = vadd.f32 %v1835_v58, %v384_v19  ;;  %v1989_v23 = vadd.f32 %v1835_v58, %v385_v20  ;;  %v407_v52 = vmul.f32 %v1811_v44, %v1832_v57 }
  0x6a   : > { %1302 = vtanh.f32 %v1976_v22  ;;  %v1998_v27 = vadd.f32 %v1835_v58, %v386_v43  ;;  %v2001_v34 = vadd.f32 %v1835_v58, %v387_v24  ;;  %v408_v26 = vmul.f32 %v1811_v44, %v1841_v62 }
  0x6b   : > { %1304 = vtanh.f32 %v1986_v25  ;;  %v409_v57 = vmul.f32 %v1811_v44, %v1850_v2  ;;  %v410_v35 = vmul.f32 %v1811_v44, %v1858_v7  ;;  %v412_v37 = vmul.f32 %v1817_v48, %v1864_v13 }
  0x6c   : > { %1306 = vtanh.f32 %v1989_v23  ;;  %v413_v58 = vmul.f32 %v1817_v48, %v1870_v18  ;;  %v414_v62 = vmul.f32 %v1817_v48, %v1879_v21  ;;  %v415_v44 = vmul.f32 %v1817_v48, %v1890_v29 }
  0x6d   : > { %1308 = vtanh.f32 %v1998_v27  ;;  %v416_v2 = vadd.f32 %v412_v37, %v407_v52  ;;  %v421_v7 = vmul.f32 %v1820_v49, %v1902_v41  ;;  %v422_v13 = vmul.f32 %v1820_v49, %v1911_v50 }
  0x6e   : > { %1310 = vtanh.f32 %v2001_v34  ;;  %v417_v48 = vadd.f32 %v413_v58, %v408_v26  ;;  %v418_v18 = vadd.f32 %v414_v62, %v409_v57  ;;  %v419_v21 = vadd.f32 %v415_v44, %v410_v35 }
  0x6f   : > { %v423_v29 = vmul.f32 %v1820_v49, %v1919_v30  ;;  %v424_v40 = vmul.f32 %v1820_v49, %v1929_v36  ;;  %v425_v41 = vadd.f32 %v421_v7, %v416_v2  ;;  %v2039_v28 = vstv %s1875_s19  ;;  %s623_s19 = sadd.s32 3, %s2013_s22 }
  0x70   : > { %v426_v45 = vadd.f32 %v422_v13, %v417_v48  ;;  %v2045_v46 = vstv %s1966_s13  ;;  %v2048_v50 = vstv %s1941_s5  ;;  %v488_v51 = vstv %s1886_s9  ;;  %s629_s9 = sadd.s32 6, %s2013_s22  ;;  %s633_s13 = sadd.s32 8, %s2013_s22 }
  0x71   : > { %v427_v55 = vadd.f32 %v423_v29, %v418_v18  ;;  %v428_v30 = vadd.f32 %v424_v40, %v419_v21  ;;  %v2052_v56 = vadd.f32 %v1838_v59, %v425_v41  ;;  %v2055_v49 = vstv %s1897_s8  ;;  %s2175_s8 = sld [smem:[#allocation3 + %s623_s19]] }
  0x72   : > { %v2058_v60 = vadd.f32 %v1838_v59, %v426_v45  ;;  %v2061_v31 = vstv %s1906_s20  ;;  %v2064_v36 = vstv %s1973_s7  ;;  %v2067_v38 = vstv %s1946_s4  ;;  %s619_s20 = sadd.s32 1, %s2013_s22  ;;  %s621_s4 = sadd.s32 2, %s2013_s22 }
  0x73   : > { %v2070_v32 = vadd.f32 %v1838_v59, %v427_v55  ;;  %v2073_v61 = vadd.f32 %v1838_v59, %v428_v30  ;;  %1312 = vtanh.f32 %v2052_v56  ;;  %v2077_v1 = vstv %s1915_s6  ;;  %s2180_s6 = sld [smem:[#allocation3 + %s629_s9]]  ;;  %s641_s9 = sadd.s32 12, %s2013_s22 }
  0x74   : > { %v1297_v3 = vpop.eup %1296  ;;  %1314 = vtanh.f32 %v2058_v60  ;;  %v2081_v4 = vstv %s1925_s23  ;;  %v2084_v33 = vstv %s1935_s1  ;;  %v2087_v6 = vstv %s1981_s0  ;;  %s625_s23 = sadd.s32 4, %s2013_s22  ;;  %s631_s1 = sadd.s32 7, %s2013_s22 }
  0x75   : > { %v1299_v8 = vpop.eup %1298  ;;  %v357_v59 = vmul.f32 %v1297_v3, %v1814_v47  ;;  %1316 = vtanh.f32 %v2070_v32  ;;  %v2092_v42 = vstv %s1956_s25  ;;  %v2095_v9 = vstv %s1993_s10  ;;  %s2203_s5 = sld [smem:[#allocation3 + %s619_s20]]  ;;  %s635_s10 = sadd.s32 9, %s2013_s22 }
  0x76   : > { %v1301_v10 = vpop.eup %1300  ;;  %v358_v39 = vmul.f32 %v1299_v8, %v1814_v47  ;;  %1318 = vtanh.f32 %v2073_v61  ;;  %v2106_v15 = vstv %s2015_s18  ;;  %v2109_v16 = vstv %s2024_s27  ;;  %s2217_s25 = sld [smem:[#allocation3 + %s625_s23]]  ;;  %s639_s18 = sadd.s32 11, %s2013_s22 }
  0x77   : > { %v1303_v19 = vpop.eup %1302  ;;  %v359_v20 = vmul.f32 %v1301_v10, %v1814_v47  ;;  %v361_v43 = vadd.f32 %v357_v59, %v1950_v12  ;;  %v2114_v24 = vstv %s2031_s14  ;;  %v2117_v52 = vstv %s2042_s16  ;;  %s2228_s7 = sld [smem:[#allocation3 + %s621_s4]]  ;;  %s659_s27 = sadd.s32 21, %s2013_s22 }
  0x78   : > { %v1305_v26 = vpop.eup %1304  ;;  %v360_v57 = vmul.f32 %v1303_v19, %v1814_v47  ;;  %v362_v35 = vadd.f32 %v358_v39, %v1960_v14  ;;  %v2123_v37 = vmul.f32 %v2098_v11, %v2117_v52  ;;  %v2127_v58 = vmul.f32 %v2101_v5, %v2117_v52  ;;  %s2235_s0 = sld [smem:[#allocation3 + %s633_s13]]  ;;  %s247_s14 = sadd.s32 42, %s1674_s29 }
  0x79   : > { %v1307_v62 = vpop.eup %1306  ;;  %v363_v12 = vadd.f32 %v359_v20, %v1970_v17  ;;  %v398_v44 = vmul.f32 %v1305_v26, %v1826_v53  ;;  %v448_v2 = vmul.f32 %v1844_v63, %v361_v43  ;;  %v489_v7 = vmul.f32 %v488_v51, %v361_v43  ;;  %s2349_s30 = sld [smem:[#allocation3 + %s635_s10]]  ;;  %s643_s29 = sadd.s32 13, %s2013_s22 }
  0x7a   : > { %v1309_v13 = vpop.eup %1308  ;;  %v364_v47 = vadd.f32 %v360_v57, %v1976_v22  ;;  %v399_v14 = vmul.f32 %v1307_v62, %v1826_v53  ;;  %v449_v48 = vmul.f32 %v1844_v63, %v362_v35  ;;  %v490_v18 = vmul.f32 %v488_v51, %v362_v35  ;;  %s2365_s16 = sld [smem:[#allocation3 + %s637_s17]]  ;;  %s649_s4 = sadd.s32 16, %s2013_s22 }
  0x7b   : > { %v1311_v21 = vpop.eup %1310  ;;  %v400_v29 = vmul.f32 %v1309_v13, %v1826_v53  ;;  %v402_v40 = vadd.f32 %v398_v44, %v1986_v25  ;;  %v450_v17 = vmul.f32 %v1844_v63, %v363_v12  ;;  %v491_v41 = vmul.f32 %v488_v51, %v363_v12  ;;  %s2374_s19 = sld [smem:[#allocation3 + %s639_s18]]  ;;  %s661_s13 = sadd.s32 22, %s2013_s22 }
  0x7c   : > { %v401_v45 = vmul.f32 %v1311_v21, %v1826_v53  ;;  %v403_v55 = vadd.f32 %v399_v14, %v1989_v23  ;;  %v451_v30 = vmul.f32 %v1844_v63, %v364_v47  ;;  %v492_v22 = vmul.f32 %v488_v51, %v364_v47  ;;  %s2391_s20 = sld [smem:[#allocation3 + %s247_s14]]  ;;  %s663_s18 = sadd.s32 23, %s2013_s22 }
  0x7d   : > { %v404_v3 = vadd.f32 %v400_v29, %v1998_v27  ;;  %v453_v8 = vmul.f32 %v1847_v0, %v402_v40  ;;  %v494_v59 = vmul.f32 %v2055_v49, %v402_v40  ;;  %v530_v10 = vmul.f32 %v2077_v1, %v361_v43  ;;  %s2412_s23 = sld [smem:[#allocation3 + %s643_s29]] }
  0x7e   : > { %v405_v25 = vadd.f32 %v401_v45, %v2001_v34  ;;  %v454_v39 = vmul.f32 %v1847_v0, %v403_v55  ;;  %v495_v19 = vmul.f32 %v2055_v49, %v403_v55  ;;  %v531_v53 = vmul.f32 %v2077_v1, %v362_v35  ;;  %s2467_s11 = sld [smem:[#allocation3 + %s661_s13]]  ;;  %s675_s13 = sadd.s32 29, %s2013_s22 }
  0x7f   : > { %v455_v23 = vmul.f32 %v1847_v0, %v404_v3  ;;  %v457_v63 = vadd.f32 %v453_v8, %v448_v2  ;;  %v496_v51 = vmul.f32 %v2055_v49, %v404_v3  ;;  %v498_v27 = vadd.f32 %v494_v59, %v489_v7  ;;  %s2515_s29 = sld [smem:[#allocation3 + %s663_s18]] }
  0x80   : > { %v1313_v20 = vpop.eup %1312  ;;  %v456_v26 = vmul.f32 %v1847_v0, %v405_v25  ;;  %v458_v57 = vadd.f32 %v454_v39, %v449_v48  ;;  %v497_v43 = vmul.f32 %v2055_v49, %v405_v25  ;;  %v499_v62 = vadd.f32 %v495_v19, %v490_v18 }
  0x81   : > { %v1315_v34 = vpop.eup %1314  ;;  %v439_v44 = vmul.f32 %v1313_v20, %v1829_v54  ;;  %v459_v13 = vadd.f32 %v455_v23, %v450_v17  ;;  %v500_v14 = vadd.f32 %v496_v51, %v491_v41  ;;  %v532_v35 = vmul.f32 %v2077_v1, %v363_v12 }
  0x82   : > { %v1317_v21 = vpop.eup %1316  ;;  %v440_v2 = vmul.f32 %v1315_v34, %v1829_v54  ;;  %v460_v29 = vadd.f32 %v456_v26, %v451_v30  ;;  %v501_v7 = vadd.f32 %v497_v43, %v492_v22  ;;  %v533_v0 = vmul.f32 %v2077_v1, %v364_v47  ;;  %v1189_v43 = vld [vmem:[%s1667_s28 + $0x30] sm:$0xff] }
  0x83   : > { %v1319_v48 = vpop.eup %1318  ;;  %v441_v49 = vmul.f32 %v1317_v21, %v1829_v54  ;;  %v443_v18 = vadd.f32 %v439_v44, %v2052_v56  ;;  %v535_v45 = vmul.f32 %v2081_v4, %v402_v40  ;;  %v536_v17 = vmul.f32 %v2081_v4, %v403_v55 }
  0x84   : > { %v442_v41 = vmul.f32 %v1319_v48, %v1829_v54  ;;  %v444_v12 = vadd.f32 %v440_v2, %v2058_v60  ;;  %v537_v8 = vmul.f32 %v2081_v4, %v404_v3  ;;  %v538_v30 = vmul.f32 %v2081_v4, %v405_v25 }
  0x85   : > { %v445_v1 = vadd.f32 %v441_v49, %v2070_v32  ;;  %v462_v47 = vmul.f32 %v2039_v28, %v443_v18  ;;  %v503_v22 = vmul.f32 %v2061_v31, %v443_v18  ;;  %v539_v56 = vadd.f32 %v535_v45, %v530_v10 }
  0x86   : > { %v446_v40 = vadd.f32 %v442_v41, %v2073_v61  ;;  %v463_v54 = vmul.f32 %v2039_v28, %v444_v12  ;;  %v504_v60 = vmul.f32 %v2061_v31, %v444_v12  ;;  %v540_v55 = vadd.f32 %v536_v17, %v531_v53 }
  0x87   : > { %v464_v4 = vmul.f32 %v2039_v28, %v445_v1  ;;  %v466_v3 = vadd.f32 %v462_v47, %v457_v63  ;;  %v505_v32 = vmul.f32 %v2061_v31, %v445_v1  ;;  %v507_v59 = vadd.f32 %v503_v22, %v498_v27 }
  0x88   : > { %v465_v10 = vmul.f32 %v2039_v28, %v446_v40  ;;  %v467_v25 = vadd.f32 %v463_v54, %v458_v57  ;;  %v506_v61 = vmul.f32 %v2061_v31, %v446_v40  ;;  %v508_v39 = vadd.f32 %v504_v60, %v499_v62  ;;  %v2208_v62 = vld [vmem:[%s1667_s28 + $0x38] sm:$0xff]  ;;  %s2224_s28 = sld [smem:[#allocation3 + %s631_s1]]  ;;  %s645_s1 = sadd.s32 14, %s2013_s22 }
  0x89   : > { %v468_v19 = vadd.f32 %v464_v4, %v459_v13  ;;  %v2183_v53 = vadd.f32 %v2045_v46, %v466_v3  ;;  %v509_v23 = vadd.f32 %v505_v32, %v500_v14  ;;  %v2186_v63 = vadd.f32 %v2064_v36, %v507_v59 }
  0x8a   : > { %v469_v28 = vadd.f32 %v465_v10, %v460_v29  ;;  %v2190_v51 = vadd.f32 %v2045_v46, %v467_v25  ;;  %v510_v31 = vadd.f32 %v506_v61, %v501_v7  ;;  %v2193_v27 = vadd.f32 %v2064_v36, %v508_v39 }
  0x8b   : > { %v2197_v20 = vadd.f32 %v2045_v46, %v468_v19  ;;  %1320 = vtanh.f32 %v2183_v53  ;;  %v2201_v26 = vadd.f32 %v2064_v36, %v509_v23  ;;  %v541_v57 = vadd.f32 %v537_v8, %v532_v35 }
  0x8c   : > { %v2211_v34 = vadd.f32 %v2045_v46, %v469_v28  ;;  %1322 = vtanh.f32 %v2190_v51  ;;  %v2215_v44 = vadd.f32 %v2064_v36, %v510_v31  ;;  %v542_v13 = vadd.f32 %v538_v30, %v533_v0 }
  0x8d   : > { %1324 = vtanh.f32 %v2197_v20  ;;  %v544_v14 = vmul.f32 %v2084_v33, %v443_v18  ;;  %v545_v35 = vmul.f32 %v2084_v33, %v444_v12  ;;  %v546_v21 = vmul.f32 %v2084_v33, %v445_v1 }
  0x8e   : > { %1326 = vtanh.f32 %v2211_v34  ;;  %v547_v46 = vmul.f32 %v2084_v33, %v446_v40  ;;  %v713_v36 = vmul.f32 %v1189_v43, %v2117_v52  ;;  %v714_v2 = vmul.f32 %v2208_v62, %v2117_v52 }
  0x8f   : > { %1328 = vtanh.f32 %v2186_v63  ;;  %v548_v29 = vadd.f32 %v544_v14, %v539_v56  ;;  %v549_v7 = vadd.f32 %v545_v35, %v540_v55  ;;  %v550_v0 = vadd.f32 %v546_v21, %v541_v57 }
  0x90   : > { %1330 = vtanh.f32 %v2193_v27  ;;  %v551_v48 = vadd.f32 %v547_v46, %v542_v13  ;;  %v715_v33 = vstv %s2180_s6  ;;  %v2240_v49 = vstv %s2175_s8  ;;  %s2385_s8 = sld [smem:[#allocation3 + %s659_s27]]  ;;  %s2794_s27 = sshll.u32 %s1661_s21, 6 }
  0x91   : > { %1332 = vtanh.f32 %v2201_v26  ;;  %v2244_v18 = vadd.f32 %v2087_v6, %v548_v29  ;;  %v2247_v52 = vadd.f32 %v2087_v6, %v549_v7  ;;  %v2250_v45 = vadd.f32 %v2087_v6, %v550_v0  ;;  %s2405_s6 = sld [smem:[#allocation3 + %s641_s9]]  ;;  %s2501_s14 = scalar_lea.vmem [#allocation7], %s2794_s27 }
  0x92   : > { %1334 = vtanh.f32 %v2215_v44  ;;  %v2256_v17 = vadd.f32 %v2087_v6, %v551_v48  ;;  %v2259_v41 = vadd.f32 %v715_v33, %v2123_v37  ;;  %v2262_v12 = vadd.f32 %v715_v33, %v2127_v58  ;;  %s665_s9 = sadd.s32 24, %s2013_s22  ;;  %s691_s27 = sadd.s32 37, %s2013_s22 }
  0x93   : > { %1336 = vtanh.f32 %v2244_v18  ;;  %v2265_v8 = vadd.f32 %v715_v33, %v713_v36  ;;  %v2267_v30 = vadd.f32 %v715_v33, %v714_v2  ;;  %v733_v1 = vstv %s2203_s5  ;;  %s647_s5 = sadd.s32 15, %s2013_s22 }
  0x94   : > { %1338 = vtanh.f32 %v2247_v52  ;;  %v734_v6 = vmul.f32 %v2098_v11, %v733_v1  ;;  %v735_v47 = vmul.f32 %v2101_v5, %v733_v1  ;;  %v736_v37 = vmul.f32 %v1189_v43, %v733_v1 }
  0x95   : > { %1340 = vtanh.f32 %v2250_v45  ;;  %v737_v58 = vmul.f32 %v2208_v62, %v733_v1  ;;  %v738_v22 = vstv %s2224_s28  ;;  %v2277_v56 = vstv %s2217_s25  ;;  %s2453_s25 = sld [smem:[#allocation3 + %s645_s1]]  ;;  %s671_s1 = sadd.s32 27, %s2013_s22 }
  0x96   : > { %1342 = vtanh.f32 %v2256_v17  ;;  %v2280_v40 = vadd.f32 %v738_v22, %v734_v6  ;;  %v2282_v54 = vadd.f32 %v738_v22, %v735_v47  ;;  %v2284_v60 = vadd.f32 %v738_v22, %v736_v37  ;;  %s2460_s28 = sld [smem:[#allocation3 + %s647_s5]] }
  0x97   : > { %1344 = vtanh.f32 %v2259_v41  ;;  %v2287_v55 = vadd.f32 %v738_v22, %v737_v58  ;;  %v756_v4 = vstv %s2228_s7  ;;  %v761_v3 = vstv %s2235_s0  ;;  %s2464_s7 = sld [smem:[#allocation3 + %s649_s4]]  ;;  %s651_s0 = sadd.s32 17, %s2013_s22 }
  0x98   : > { %v1321_v32 = vpop.eup %1320  ;;  %1346 = vtanh.f32 %v2262_v12  ;;  %v757_v59 = vmul.f32 %v2098_v11, %v756_v4  ;;  %v758_v10 = vmul.f32 %v2101_v5, %v756_v4  ;;  %v759_v25 = vmul.f32 %v1189_v43, %v756_v4  ;;  %s2489_s10 = sld [smem:[#allocation3 + %s651_s0]]  ;;  %s673_s4 = sadd.s32 28, %s2013_s22 }
  0x99   : > { %v1323_v61 = vpop.eup %1322  ;;  %v480_v39 = vmul.f32 %v1321_v32, %v2048_v50  ;;  %1348 = vtanh.f32 %v2265_v8  ;;  %v760_v19 = vmul.f32 %v2208_v62, %v756_v4  ;;  %v2298_v23 = vstv %s2252_s3  ;;  %s653_s3 = sadd.s32 18, %s2013_s22  ;;  %s689_s0 = sadd.s32 36, %s2013_s22 }
  0x9a   : > { %v1325_v28 = vpop.eup %1324  ;;  %v481_v31 = vmul.f32 %v1323_v61, %v2048_v50  ;;  %1350 = vtanh.f32 %v2267_v30  ;;  %v2302_v57 = vadd.f32 %v761_v3, %v757_v59  ;;  %v2304_v11 = vadd.f32 %v761_v3, %v758_v10  ;;  %s2494_s17 = sld [smem:[#allocation3 + %s653_s3]] }
  0x9b   : > { %v1327_v5 = vpop.eup %1326  ;;  %v482_v43 = vmul.f32 %v1325_v28, %v2048_v50  ;;  %v484_v13 = vadd.f32 %v480_v39, %v2183_v53  ;;  %1352 = vtanh.f32 %v2280_v40  ;;  %v2309_v14 = vadd.f32 %v761_v3, %v759_v25  ;;  %s2561_s3 = sld [smem:[#allocation3 + %s675_s13]] }
  0x9c   : > { %v1329_v62 = vpop.eup %1328  ;;  %v483_v35 = vmul.f32 %v1327_v5, %v2048_v50  ;;  %v485_v21 = vadd.f32 %v481_v31, %v2190_v51  ;;  %1354 = vtanh.f32 %v2282_v54  ;;  %v2314_v46 = vadd.f32 %v761_v3, %v760_v19  ;;  %s2574_s18 = sld [smem:[#allocation3 + %s689_s0]] }
  0x9d   : > { %v1331_v36 = vpop.eup %1330  ;;  %v486_v2 = vadd.f32 %v482_v43, %v2197_v20  ;;  %v521_v29 = vmul.f32 %v1329_v62, %v2067_v38  ;;  %v571_v53 = vmul.f32 %v2095_v9, %v484_v13  ;;  %1356 = vtanh.f32 %v2284_v60 }
  0x9e   : > { %v1333_v7 = vpop.eup %1332  ;;  %v487_v0 = vadd.f32 %v483_v35, %v2211_v34  ;;  %v522_v50 = vmul.f32 %v1331_v36, %v2067_v38  ;;  %v572_v51 = vmul.f32 %v2095_v9, %v485_v21  ;;  %1358 = vtanh.f32 %v2287_v55 }
  0x9f   : > { %v1335_v48 = vpop.eup %1334  ;;  %v523_v33 = vmul.f32 %v1333_v7, %v2067_v38  ;;  %v525_v20 = vadd.f32 %v521_v29, %v2186_v63  ;;  %v573_v1 = vmul.f32 %v2095_v9, %v486_v2  ;;  %1360 = vtanh.f32 %v2302_v57 }
  0xa0   : > { %v1337_v6 = vpop.eup %1336  ;;  %v524_v47 = vmul.f32 %v1335_v48, %v2067_v38  ;;  %v526_v34 = vadd.f32 %v522_v50, %v2193_v27  ;;  %v574_v37 = vmul.f32 %v2095_v9, %v487_v0  ;;  %1362 = vtanh.f32 %v2304_v11 }
  0xa1   : > { %v1339_v58 = vpop.eup %1338  ;;  %v527_v22 = vadd.f32 %v523_v33, %v2201_v26  ;;  %v562_v4 = vmul.f32 %v1337_v6, %v2092_v42  ;;  %v576_v63 = vmul.f32 %v2106_v15, %v525_v20  ;;  %1364 = vtanh.f32 %v2309_v14 }
  0xa2   : > { %v1341_v3 = vpop.eup %1340  ;;  %v528_v32 = vadd.f32 %v524_v47, %v2215_v44  ;;  %v563_v38 = vmul.f32 %v1339_v58, %v2092_v42  ;;  %v577_v27 = vmul.f32 %v2106_v15, %v526_v34  ;;  %1366 = vtanh.f32 %v2314_v46 }
  0xa3   : > { %v1343_v9 = vpop.eup %1342  ;;  %v564_v26 = vmul.f32 %v1341_v3, %v2092_v42  ;;  %v566_v59 = vadd.f32 %v562_v4, %v2244_v18  ;;  %v578_v10 = vmul.f32 %v2106_v15, %v527_v22  ;;  %v580_v25 = vadd.f32 %v576_v63, %v571_v53 }
  0xa4   : > { %v1345_v61 = vpop.eup %1344  ;;  %v565_v44 = vmul.f32 %v1343_v9, %v2092_v42  ;;  %v567_v39 = vadd.f32 %v563_v38, %v2247_v52  ;;  %v579_v19 = vmul.f32 %v2106_v15, %v528_v32  ;;  %v581_v28 = vadd.f32 %v577_v27, %v572_v51 }
  0xa5   : > { %v1347_v31 = vpop.eup %1346  ;;  %v568_v5 = vadd.f32 %v564_v26, %v2250_v45  ;;  %v582_v43 = vadd.f32 %v578_v10, %v573_v1  ;;  %v585_v13 = vmul.f32 %v2109_v16, %v566_v59  ;;  %v725_v18 = vmul.f32 %v1345_v61, %v2240_v49 }
  0xa6   : > { %v1349_v62 = vpop.eup %1348  ;;  %v569_v42 = vadd.f32 %v565_v44, %v2256_v17  ;;  %v583_v52 = vadd.f32 %v579_v19, %v574_v37  ;;  %v586_v15 = vmul.f32 %v2109_v16, %v567_v39  ;;  %v726_v35 = vmul.f32 %v1347_v31, %v2240_v49 }
  0xa7   : > { %v1351_v21 = vpop.eup %1350  ;;  %v587_v45 = vmul.f32 %v2109_v16, %v568_v5  ;;  %v589_v36 = vadd.f32 %v585_v13, %v580_v25  ;;  %v727_v2 = vmul.f32 %v1349_v62, %v2240_v49  ;;  %v2361_v29 = vadd.f32 %v725_v18, %v2259_v41 }
  0xa8   : > { %v1353_v53 = vpop.eup %1352  ;;  %v588_v17 = vmul.f32 %v2109_v16, %v569_v42  ;;  %v590_v7 = vadd.f32 %v586_v15, %v581_v28  ;;  %v728_v0 = vmul.f32 %v1351_v21, %v2240_v49  ;;  %v2369_v50 = vadd.f32 %v726_v35, %v2262_v12 }
  0xa9   : > { %v1355_v51 = vpop.eup %1354  ;;  %v591_v48 = vadd.f32 %v587_v45, %v582_v43  ;;  %v2372_v33 = vadd.f32 %v2114_v24, %v589_v36  ;;  %v2378_v41 = vadd.f32 %v727_v2, %v2265_v8  ;;  %v748_v16 = vmul.f32 %v1353_v53, %v2277_v56 }
  0xaa   : > { %v1357_v20 = vpop.eup %1356  ;;  %v592_v1 = vadd.f32 %v588_v17, %v583_v52  ;;  %v2382_v49 = vadd.f32 %v2114_v24, %v590_v7  ;;  %v2388_v12 = vadd.f32 %v728_v0, %v2267_v30  ;;  %v749_v6 = vmul.f32 %v1355_v51, %v2277_v56 }
  0xab   : > { %v1359_v47 = vpop.eup %1358  ;;  %v2394_v8 = vadd.f32 %v2114_v24, %v591_v48  ;;  %1368 = vtanh.f32 %v2372_v33  ;;  %v750_v34 = vmul.f32 %v1357_v20, %v2277_v56  ;;  %v2399_v37 = vadd.f32 %v748_v16, %v2280_v40 }
  0xac   : > { %v1361_v58 = vpop.eup %1360  ;;  %v2402_v30 = vadd.f32 %v2114_v24, %v592_v1  ;;  %1370 = vtanh.f32 %v2382_v49  ;;  %v751_v22 = vmul.f32 %v1359_v47, %v2277_v56  ;;  %v2409_v4 = vadd.f32 %v749_v6, %v2282_v54 }
  0xad   : > { %v1363_v63 = vpop.eup %1362  ;;  %1372 = vtanh.f32 %v2394_v8  ;;  %v2415_v40 = vadd.f32 %v750_v34, %v2284_v60  ;;  %v771_v24 = vmul.f32 %v1361_v58, %v2298_v23  ;;  %v779_v3 = vstv %s2349_s30  ;;  %s655_s30 = sadd.s32 19, %s2013_s22 }
  0xae   : > { %v1365_v32 = vpop.eup %1364  ;;  %1374 = vtanh.f32 %v2402_v30  ;;  %v2421_v56 = vadd.f32 %v751_v22, %v2287_v55  ;;  %v772_v54 = vmul.f32 %v1363_v63, %v2298_v23  ;;  %v780_v38 = vmul.f32 %v779_v3, %v2361_v29 }
  0xaf   : > { %v1367_v27 = vpop.eup %1366  ;;  %v773_v60 = vmul.f32 %v1365_v32, %v2298_v23  ;;  %v2427_v9 = vadd.f32 %v771_v24, %v2302_v57  ;;  %v781_v26 = vmul.f32 %v779_v3, %v2369_v50  ;;  %v782_v59 = vmul.f32 %v779_v3, %v2378_v41 }
  0xb0   : > { %v774_v55 = vmul.f32 %v1367_v27, %v2298_v23  ;;  %v2433_v10 = vadd.f32 %v772_v54, %v2304_v11  ;;  %v783_v25 = vmul.f32 %v779_v3, %v2388_v12  ;;  %v784_v61 = vstv %s2365_s16  ;;  %s657_s16 = sadd.s32 20, %s2013_s22 }
  0xb1   : > { %v2439_v44 = vadd.f32 %v773_v60, %v2309_v14  ;;  %v785_v57 = vmul.f32 %v784_v61, %v2399_v37  ;;  %v786_v39 = vmul.f32 %v784_v61, %v2409_v4  ;;  %v787_v19 = vmul.f32 %v784_v61, %v2415_v40 }
  0xb2   : > { %v2446_v23 = vadd.f32 %v774_v55, %v2314_v46  ;;  %v788_v11 = vmul.f32 %v784_v61, %v2421_v56  ;;  %v793_v28 = vstv %s2374_s19  ;;  %v802_v31 = vstv %s2385_s8  ;;  %s2508_s19 = sld [smem:[#allocation3 + %s655_s30]]  ;;  %s667_s8 = sadd.s32 25, %s2013_s22 }
  0xb3   : > { %v789_v14 = vadd.f32 %v785_v57, %v780_v38  ;;  %v790_v5 = vadd.f32 %v786_v39, %v781_v26  ;;  %v791_v43 = vadd.f32 %v787_v19, %v782_v59  ;;  %v794_v13 = vmul.f32 %v793_v28, %v2427_v9  ;;  %s2533_s5 = sld [smem:[#allocation3 + %s667_s8]]  ;;  %s679_s30 = sadd.s32 31, %s2013_s22 }
  0xb4   : > { %v792_v18 = vadd.f32 %v788_v11, %v783_v25  ;;  %v795_v62 = vmul.f32 %v793_v28, %v2433_v10  ;;  %v796_v46 = vmul.f32 %v793_v28, %v2439_v44  ;;  %v797_v42 = vmul.f32 %v793_v28, %v2446_v23  ;;  %s693_s8 = sadd.s32 38, %s2013_s22 }
  0xb5   : > { %v602_v52 = vstv %s2391_s20  ;;  %v798_v15 = vadd.f32 %v794_v13, %v789_v14  ;;  %v820_v35 = vstv %s2405_s6  ;;  %v825_v21 = vstv %s2412_s23  ;;  %s2523_s20 = sld [smem:[#allocation3 + %s657_s16]]  ;;  %s669_s6 = sadd.s32 26, %s2013_s22 }
  0xb6   : > { %v799_v45 = vadd.f32 %v795_v62, %v790_v5  ;;  %v800_v36 = vadd.f32 %v796_v46, %v791_v43  ;;  %v801_v2 = vadd.f32 %v797_v42, %v792_v18  ;;  %v821_v53 = vmul.f32 %v820_v35, %v2361_v29  ;;  %s2527_s23 = sld [smem:[#allocation3 + %s665_s9]] }
  0xb7   : > { %v2469_v17 = vadd.f32 %v802_v31, %v798_v15  ;;  %v822_v7 = vmul.f32 %v820_v35, %v2369_v50  ;;  %v823_v0 = vmul.f32 %v820_v35, %v2378_v41  ;;  %v824_v51 = vmul.f32 %v820_v35, %v2388_v12  ;;  %s2577_s16 = sld [smem:[#allocation3 + %s679_s30]] }
  0xb8   : > { %v1369_v48 = vpop.eup %1368  ;;  %v2475_v16 = vadd.f32 %v802_v31, %v799_v45  ;;  %v2477_v20 = vadd.f32 %v802_v31, %v800_v36  ;;  %v2479_v1 = vadd.f32 %v802_v31, %v801_v2  ;;  %v826_v6 = vmul.f32 %v825_v21, %v2399_v37 }
  0xb9   : > { %v1371_v47 = vpop.eup %1370  ;;  %v603_v34 = vmul.f32 %v1369_v48, %v602_v52  ;;  %1376 = vtanh.f32 %v2469_v17  ;;  %v827_v58 = vmul.f32 %v825_v21, %v2409_v4  ;;  %v828_v22 = vmul.f32 %v825_v21, %v2415_v40 }
  0xba   : > { %v1373_v63 = vpop.eup %1372  ;;  %v604_v24 = vmul.f32 %v1371_v47, %v602_v52  ;;  %1378 = vtanh.f32 %v2475_v16  ;;  %v829_v3 = vmul.f32 %v825_v21, %v2421_v56  ;;  %v830_v32 = vadd.f32 %v826_v6, %v821_v53 }
  0xbb   : > { %v1375_v54 = vpop.eup %1374  ;;  %v605_v38 = vmul.f32 %v1373_v63, %v602_v52  ;;  %v607_v27 = vadd.f32 %v603_v34, %v2372_v33  ;;  %1380 = vtanh.f32 %v2477_v20  ;;  %v831_v60 = vadd.f32 %v827_v58, %v822_v7 }
  0xbc   : > { %v606_v26 = vmul.f32 %v1375_v54, %v602_v52  ;;  %v608_v59 = vadd.f32 %v604_v24, %v2382_v49  ;;  %1382 = vtanh.f32 %v2479_v1  ;;  %v832_v55 = vadd.f32 %v828_v22, %v823_v0 }
  0xbd   : > { %v609_v33 = vadd.f32 %v605_v38, %v2394_v8  ;;  %611 = vst [vmem:[%s2501_s14] sm:$0xff] %v607_v27  ;;  %v833_v49 = vadd.f32 %v829_v3, %v824_v51  ;;  %v834_v25 = vstv %s2453_s25  ;;  %v843_v11 = vstv %s2467_s11  ;;  %s2543_s25 = sld [smem:[#allocation3 + %s669_s6]] }
  0xbe   : > { %v610_v61 = vadd.f32 %v606_v26, %v2402_v30  ;;  %612 = vst [vmem:[%s2501_s14 + $0x8] sm:$0xff] %v608_v59  ;;  %v835_v8 = vmul.f32 %v834_v25, %v2427_v9  ;;  %v836_v57 = vmul.f32 %v834_v25, %v2433_v10  ;;  %v837_v39 = vmul.f32 %v834_v25, %v2439_v44  ;;  %s2557_s11 = sld [smem:[#allocation3 + %s673_s4]]  ;;  %s687_s4 = sadd.s32 35, %s2013_s22 }
  0xbf   : > { %613 = vst [vmem:[%s2501_s14 + $0x10] sm:$0xff] %v609_v33  ;;  %v838_v19 = vmul.f32 %v834_v25, %v2446_v23  ;;  %v861_v30 = vstv %s2460_s28  ;;  %v866_v28 = vstv %s2464_s7  ;;  %s2551_s28 = sld [smem:[#allocation3 + %s671_s1]]  ;;  %s677_s7 = sadd.s32 30, %s2013_s22  ;;  %v811_v21 = vstv %s2494_s17 }
  0xc0   : > { %614 = vst [vmem:[%s2501_s14 + $0x18] sm:$0xff] %v610_v61  ;;  %v839_v31 = vadd.f32 %v835_v8, %v830_v32  ;;  %v840_v14 = vadd.f32 %v836_v57, %v831_v60  ;;  %v841_v5 = vadd.f32 %v837_v39, %v832_v55  ;;  %v862_v43 = vmul.f32 %v861_v30, %v2361_v29  ;;  %s681_s17 = sadd.s32 32, %s2013_s22  ;;  %s2599_s6 = sld [smem:[#allocation3 + %s693_s8]] }
  0xc1   : > { %v842_v13 = vadd.f32 %v838_v19, %v833_v49  ;;  %v863_v18 = vmul.f32 %v861_v30, %v2369_v50  ;;  %v864_v62 = vmul.f32 %v861_v30, %v2378_v41  ;;  %v865_v46 = vmul.f32 %v861_v30, %v2388_v12  ;;  %s2579_s9 = sld [smem:[#allocation3 + %s681_s17]]  ;;  %s695_s1 = sadd.s32 39, %s2013_s22 }
  0xc2   : > { %v2536_v42 = vadd.f32 %v843_v11, %v839_v31  ;;  %v2538_v52 = vadd.f32 %v843_v11, %v840_v14  ;;  %v2540_v29 = vadd.f32 %v843_v11, %v841_v5  ;;  %v867_v15 = vmul.f32 %v866_v28, %v2399_v37  ;;  %s696_s13 = sld [smem:[#allocation3 + %s695_s1]]  ;;  %s1556_s8 = smov [#allocation7]  }
  0xc3   : > { %v2546_v50 = vadd.f32 %v843_v11, %v842_v13  ;;  %v868_v41 = vmul.f32 %v866_v28, %v2409_v4  ;;  %v869_v12 = vmul.f32 %v866_v28, %v2415_v40  ;;  %v870_v35 = vmul.f32 %v866_v28, %v2421_v56 }
  0xc4   : > { %1384 = vtanh.f32 %v2536_v42  ;;  %v871_v45 = vadd.f32 %v867_v15, %v862_v43  ;;  %v875_v37 = vstv %s2489_s10  ;;  %s2568_s10 = sld [smem:[#allocation3 + %s677_s7]]  ;;  %v884_v6 = vstv %s2515_s29  ;;  %s699_s7 = sadd.s32 41, %s2013_s22 }
  0xc5   : > { %1386 = vtanh.f32 %v2538_v52  ;;  %v872_v4 = vadd.f32 %v868_v41, %v863_v18  ;;  %v873_v40 = vadd.f32 %v869_v12, %v864_v62  ;;  %v874_v36 = vadd.f32 %v870_v35, %v865_v46  ;;  %s2585_s29 = sld [smem:[#allocation3 + %s691_s27]] }
  0xc6   : > { %v1377_v2 = vpop.eup %1376  ;;  %1388 = vtanh.f32 %v2540_v29  ;;  %v876_v56 = vmul.f32 %v875_v37, %v2427_v9  ;;  %v877_v53 = vmul.f32 %v875_v37, %v2433_v10  ;;  %v878_v7 = vmul.f32 %v875_v37, %v2439_v44  ;;  %s2696_s0 = sld [smem:[#allocation3 + %s699_s7]] }
  0xc7   : > { %v1379_v0 = vpop.eup %1378  ;;  %v812_v51 = vmul.f32 %v1377_v2, %v811_v21  ;;  %1390 = vtanh.f32 %v2546_v50  ;;  %v879_v48 = vmul.f32 %v875_v37, %v2446_v23  ;;  %v902_v59 = vstv %s2527_s23  ;;  %s685_s23 = sadd.s32 34, %s2013_s22 }
  0xc8   : > { %v1381_v47 = vpop.eup %1380  ;;  %v813_v9 = vmul.f32 %v1379_v0, %v811_v21  ;;  %v880_v34 = vadd.f32 %v876_v56, %v871_v45  ;;  %v881_v10 = vadd.f32 %v877_v53, %v872_v4  ;;  %v882_v58 = vadd.f32 %v878_v7, %v873_v40 }
  0xc9   : > { %v1383_v44 = vpop.eup %1382  ;;  %v814_v22 = vmul.f32 %v1381_v47, %v811_v21  ;;  %v883_v63 = vadd.f32 %v879_v48, %v874_v36  ;;  %v816_v32 = vadd.f32 %v812_v51, %v2469_v17  ;;  %v852_v17 = vstv %s2508_s19  ;;  %s683_s19 = sadd.s32 33, %s2013_s22 }
  0xca   : > { %v815_v23 = vmul.f32 %v1383_v44, %v811_v21  ;;  %v2581_v24 = vadd.f32 %v884_v6, %v880_v34  ;;  %v2583_v3 = vadd.f32 %v884_v6, %v881_v10  ;;  %v817_v54 = vadd.f32 %v813_v9, %v2475_v16 }
  0xcb   : > { %v2590_v38 = vadd.f32 %v884_v6, %v882_v58  ;;  %v2592_v27 = vadd.f32 %v884_v6, %v883_v63  ;;  %v818_v60 = vadd.f32 %v814_v22, %v2477_v20  ;;  %v2604_v16 = vstv %s2523_s20  ;;  %s684_s20 = sld [smem:[#allocation3 + %s683_s19]] }
  0xcc   : > { %v819_v26 = vadd.f32 %v815_v23, %v2479_v1  ;;  %1392 = vtanh.f32 %v2581_v24  ;;  %v943_v55 = vstv %s2551_s28  ;;  %v903_v20 = vmul.f32 %v902_v59, %v816_v32  ;;  %s688_s28 = sld [smem:[#allocation3 + %s687_s4]] }
  0xcd   : > { %1394 = vtanh.f32 %v2583_v3  ;;  %v904_v1 = vmul.f32 %v902_v59, %v817_v54  ;;  %v907_v33 = vstv %s2533_s5  ;;  %v905_v49 = vmul.f32 %v902_v59, %v818_v60  ;;  %s686_s5 = sld [smem:[#allocation3 + %s685_s23]] }
  0xce   : > { %1396 = vtanh.f32 %v2590_v38  ;;  %v906_v25 = vmul.f32 %v902_v59, %v819_v26  ;;  %v2610_v61 = vstv %s2543_s25  ;;  %v2613_v8 = vstv %s2574_s18  ;;  %s697_s25 = sadd.s32 40, %s2013_s22  ;;  %s1204_s18 = sshll.u32 %s1542_s15, 10 }
  0xcf   : > { %1398 = vtanh.f32 %v2592_v27  ;;  %v944_v39 = vmul.f32 %v943_v55, %v816_v32  ;;  %v945_v19 = vmul.f32 %v943_v55, %v817_v54  ;;  %v946_v11 = vmul.f32 %v943_v55, %v818_v60  ;;  %s1072_s15 = scalar_lea.sflag [#allocation6], %s1661_s21 }
  0xd0   : > { %v984_v30 = vstv %s2568_s10  ;;  %v947_v14 = vmul.f32 %v943_v55, %v819_v26  ;;  %v948_v5 = vstv %s2557_s11  ;;  %v2618_v43 = vstv %s2561_s3  ;;  %s698_s11 = sld [smem:[#allocation3 + %s697_s25]]  ;;  %s703_s3 = sadd.s32 43, %s2013_s22 }
  0xd1   : > { %v1385_v57 = vpop.eup %1384  ;;  %v2621_v62 = vstv %s2585_s29  ;;  %v989_v46 = vstv %s2577_s16  ;;  %v2625_v15 = vstv %s2579_s9  ;;  %v985_v21 = vmul.f32 %v984_v30, %v816_v32  ;;  %s2699_s30 = sld [smem:[#allocation3 + %s703_s3]]  ;;  %s701_s10 = sadd.s32 42, %s2013_s22 }
  0xd2   : > { %v1387_v28 = vpop.eup %1386  ;;  %v853_v31 = vmul.f32 %v1385_v57, %v852_v17  ;;  %v986_v45 = vmul.f32 %v984_v30, %v817_v54  ;;  %v987_v40 = vmul.f32 %v984_v30, %v818_v60  ;;  %v988_v36 = vmul.f32 %v984_v30, %v819_v26  ;;  %s702_s17 = sld [smem:[#allocation3 + %s701_s10]]  ;;  %s1088_s22 = sshll.u32 %s2501_s14, 4  ;;  %s2720_s22 = int_to_ptr.vmem [resolvable:$true] %s1088_s22 }
  0xd3   : > { %v1389_v13 = vpop.eup %1388  ;;  %v854_v18 = vmul.f32 %v1387_v28, %v852_v17  ;;  %v2631_v7 = vstv %s2599_s6  ;;  %s2718_s9 = scalar_lea.hbm %s2773_s2, %s1204_s18  ;;  %s1468_s29 = scalar_lea.vmem %s2720_s22, 1024 }
  0xd4   : > { %v1391_v41 = vpop.eup %1390  ;;  %v855_v12 = vmul.f32 %v1389_v13, %v852_v17  ;;  %v857_v35 = vadd.f32 %v853_v31, %v2536_v42  ;;  %p1469_p8 = scmp.ne.s32.totalorder %s2720_s22, %s1468_s29  ;;  %s1472_s6 = sshll.u32 %s1556_s8, 4  ;;  %s1473_s6 = int_to_ptr.vmem [resolvable:$false] %s1472_s6 }
  0xd5   : > { %v856_v37 = vmul.f32 %v1391_v41, %v852_v17  ;;  %v858_v4 = vadd.f32 %v854_v18, %v2538_v52  ;;  %s1474_s19 = scalar_lea.vmem %s1473_s6, 2048  ;;  %p1475_p1 = scmp.lt.s32.totalorder %s2720_s22, %s1473_s6 }
  0xd6   : > { %v859_v2 = vadd.f32 %v855_v12, %v2540_v29  ;;  %v908_v56 = vmul.f32 %v907_v33, %v857_v35  ;;  %v949_v53 = vmul.f32 %v948_v5, %v857_v35  ;;  %v990_v6 = vmul.f32 %v989_v46, %v857_v35  ;;  %p1470_p12 = pnand %p1469_p8, %p1628_p9  ;;  %p1476_p3 = scmp.lt.s32.totalorder %s1474_s19, %s1468_s29 }
  0xd7   : > { %v860_v0 = vadd.f32 %v856_v37, %v2546_v50  ;;  %v909_v51 = vmul.f32 %v907_v33, %v858_v4  ;;  %v950_v48 = vmul.f32 %v948_v5, %v858_v4  ;;  %v991_v34 = vmul.f32 %v989_v46, %v858_v4 }
  0xd8   : > { %v910_v47 = vmul.f32 %v907_v33, %v859_v2  ;;  %v912_v42 = vadd.f32 %v908_v56, %v903_v20  ;;  %v951_v9 = vmul.f32 %v948_v5, %v859_v2  ;;  %v953_v22 = vadd.f32 %v949_v53, %v944_v39  ;;  %p1471_p0 = pneg %p1470_p12  ;;  %p1477_p5 = por %p1476_p3, %p1475_p1 }
  0xd9   : > { %v1393_v10 = vpop.eup %1392  ;;  %v911_v58 = vmul.f32 %v907_v33, %v860_v0  ;;  %v913_v52 = vadd.f32 %v909_v51, %v904_v1  ;;  %v952_v44 = vmul.f32 %v948_v5, %v860_v0  ;;  %v954_v32 = vadd.f32 %v950_v48, %v945_v19 }
  0xda   : > { %v1395_v63 = vpop.eup %1394  ;;  %v894_v29 = vmul.f32 %v1393_v10, %v2604_v16  ;;  %v914_v23 = vadd.f32 %v910_v47, %v905_v49  ;;  %v992_v54 = vmul.f32 %v989_v46, %v859_v2  ;;  %v955_v59 = vadd.f32 %v951_v9, %v946_v11  ;;  %p1478_p6 = pnand %p1477_p5, %p1471_p0 }
  0xdb   : > { %v1397_v60 = vpop.eup %1396  ;;  %v895_v50 = vmul.f32 %v1395_v63, %v2604_v16  ;;  %v915_v26 = vadd.f32 %v911_v58, %v906_v25  ;;  %v993_v17 = vmul.f32 %v989_v46, %v860_v0  ;;  %v956_v1 = vadd.f32 %v952_v44, %v947_v14 }
  0xdc   : > { %v1399_v55 = vpop.eup %1398  ;;  %v896_v20 = vmul.f32 %v1397_v60, %v2604_v16  ;;  %v898_v33 = vadd.f32 %v894_v29, %v2581_v24  ;;  %v994_v57 = vadd.f32 %v990_v6, %v985_v21  ;;  %v995_v49 = vadd.f32 %v991_v34, %v986_v45 }
  0xdd   : > { %v897_v39 = vmul.f32 %v1399_v55, %v2604_v16  ;;  %v899_v30 = vadd.f32 %v895_v50, %v2583_v3  ;;  %v996_v19 = vadd.f32 %v992_v54, %v987_v40  ;;  %v997_v11 = vadd.f32 %v993_v17, %v988_v36 }
  0xde   : > { %v900_v28 = vadd.f32 %v896_v20, %v2590_v38  ;;  %v917_v31 = vmul.f32 %v2610_v61, %v898_v33  ;;  %v958_v25 = vmul.f32 %v2618_v43, %v898_v33  ;;  %v999_v14 = vmul.f32 %v2625_v15, %v898_v33 }
  0xdf   : > { %v901_v5 = vadd.f32 %v897_v39, %v2592_v27  ;;  %v918_v13 = vmul.f32 %v2610_v61, %v899_v30  ;;  %v959_v24 = vmul.f32 %v2618_v43, %v899_v30  ;;  %v1000_v37 = vmul.f32 %v2625_v15, %v899_v30 }
  0xe0   : > { %v919_v16 = vmul.f32 %v2610_v61, %v900_v28  ;;  %v921_v3 = vadd.f32 %v917_v31, %v912_v42  ;;  %v960_v18 = vmul.f32 %v2618_v43, %v900_v28  ;;  %v962_v38 = vadd.f32 %v958_v25, %v953_v22 }
  0xe1   : > { %v920_v46 = vmul.f32 %v2610_v61, %v901_v5  ;;  %v922_v41 = vadd.f32 %v918_v13, %v913_v52  ;;  %v961_v12 = vmul.f32 %v2618_v43, %v901_v5  ;;  %v963_v35 = vadd.f32 %v959_v24, %v954_v32 }
  0xe2   : > { %v923_v27 = vadd.f32 %v919_v16, %v914_v23  ;;  %v926_v21 = vadd.f32 %v2613_v8, %v921_v3  ;;  %v964_v45 = vadd.f32 %v960_v18, %v955_v59  ;;  %v2655_v2 = vadd.f32 %v2621_v62, %v962_v38 }
  0xe3   : > { %v924_v4 = vadd.f32 %v920_v46, %v915_v26  ;;  %v927_v40 = vadd.f32 %v2613_v8, %v922_v41  ;;  %v965_v36 = vadd.f32 %v961_v12, %v956_v1  ;;  %v2660_v43 = vadd.f32 %v2621_v62, %v963_v35 }
  0xe4   : > { %v928_v61 = vadd.f32 %v2613_v8, %v923_v27  ;;  %1400 = vtanh.f32 %v926_v21  ;;  %v1001_v56 = vmul.f32 %v2625_v15, %v900_v28  ;;  %v2665_v0 = vadd.f32 %v2621_v62, %v964_v45 }
  0xe5   : > { %v929_v53 = vadd.f32 %v2613_v8, %v924_v4  ;;  %1402 = vtanh.f32 %v927_v40  ;;  %v1002_v51 = vmul.f32 %v2625_v15, %v901_v5  ;;  %v1003_v48 = vadd.f32 %v999_v14, %v994_v57 }
  0xe6   : > { %1404 = vtanh.f32 %v928_v61  ;;  %v1004_v6 = vadd.f32 %v1000_v37, %v995_v49  ;;  %v1005_v47 = vadd.f32 %v1001_v56, %v996_v19  ;;  %v2669_v42 = vadd.f32 %v2621_v62, %v965_v36 }
  0xe7   : > { %1406 = vtanh.f32 %v929_v53  ;;  %v1006_v9 = vadd.f32 %v1002_v51, %v997_v11  ;;  %v2674_v8 = vadd.f32 %v2631_v7, %v1003_v48  ;;  %v934_v10 = vstv %s684_s20 }
  0xe8   : > { %1408 = vtanh.f32 %v2655_v2  ;;  %v2678_v15 = vadd.f32 %v2631_v7, %v1004_v6  ;;  %v2683_v34 = vadd.f32 %v2631_v7, %v1005_v47  ;;  %v975_v63 = vstv %s686_s5 }
  0xe9   : > { %1410 = vtanh.f32 %v2660_v43  ;;  %v2688_v62 = vadd.f32 %v2631_v7, %v1006_v9  ;;  %v1025_v26 = vstv %s696_s13  ;;  %v1016_v57 = vstv %s688_s28 }
  0xea   : > { %1412 = vtanh.f32 %v2665_v0  ;;  %v1030_v39 = vstv %s698_s11  ;;  %v1039_v13 = vstv %s2696_s0  ;;  %v1048_v6 = vstv %s2699_s30 }
  0xeb   : > { %1414 = vtanh.f32 %v2669_v42 }
  0xec   : > { %1416 = vtanh.f32 %v2674_v8 }
  0xed   : > { %1418 = vtanh.f32 %v2678_v15 }
  0xee   : > { %1420 = vtanh.f32 %v2683_v34 }
  0xef   : > { %1422 = vtanh.f32 %v2688_v62 }
  0xf1   : > { %v1401_v58 = vpop.eup %1400 }
  0xf2   : > { %v1403_v7 = vpop.eup %1402  ;;  %v935_v52 = vmul.f32 %v1401_v58, %v934_v10 }
  0xf3   : > { %v1405_v44 = vpop.eup %1404  ;;  %v936_v22 = vmul.f32 %v1403_v7, %v934_v10 }
  0xf4   : > { %v1407_v29 = vpop.eup %1406  ;;  %v937_v23 = vmul.f32 %v1405_v44, %v934_v10  ;;  %v939_v32 = vadd.f32 %v935_v52, %v926_v21 }
  0xf5   : > { %v1409_v54 = vpop.eup %1408  ;;  %v938_v60 = vmul.f32 %v1407_v29, %v934_v10  ;;  %v940_v50 = vadd.f32 %v936_v22, %v927_v40 }
  0xf6   : > { %v1411_v59 = vpop.eup %1410  ;;  %v941_v17 = vadd.f32 %v937_v23, %v928_v61  ;;  %v976_v55 = vmul.f32 %v1409_v54, %v975_v63  ;;  %v1026_v28 = vmul.f32 %v1025_v26, %v939_v32 }
  0xf7   : > { %v1413_v20 = vpop.eup %1412  ;;  %v942_v33 = vadd.f32 %v938_v60, %v929_v53  ;;  %v977_v1 = vmul.f32 %v1411_v59, %v975_v63  ;;  %v1027_v5 = vmul.f32 %v1025_v26, %v940_v50 }
  0xf8   : > { %v1415_v30 = vpop.eup %1414  ;;  %v978_v49 = vmul.f32 %v1413_v20, %v975_v63  ;;  %v980_v19 = vadd.f32 %v976_v55, %v2655_v2  ;;  %v1028_v3 = vmul.f32 %v1025_v26, %v941_v17 }
  0xf9   : > { %v1417_v31 = vpop.eup %1416  ;;  %v979_v25 = vmul.f32 %v1415_v30, %v975_v63  ;;  %v981_v11 = vadd.f32 %v977_v1, %v2660_v43  ;;  %v1029_v12 = vmul.f32 %v1025_v26, %v942_v33 }
  0xfa   : > { %v1419_v24 = vpop.eup %1418  ;;  %v982_v14 = vadd.f32 %v978_v49, %v2665_v0  ;;  %v1017_v16 = vmul.f32 %v1417_v31, %v1016_v57  ;;  %v1031_v18 = vmul.f32 %v1030_v39, %v980_v19 }
  0xfb   : > { %v1421_v38 = vpop.eup %1420  ;;  %v983_v46 = vadd.f32 %v979_v25, %v2669_v42  ;;  %v1018_v41 = vmul.f32 %v1419_v24, %v1016_v57  ;;  %v1032_v35 = vmul.f32 %v1030_v39, %v981_v11 }
  0xfc   : > { %v1423_v27 = vpop.eup %1422  ;;  %v1019_v21 = vmul.f32 %v1421_v38, %v1016_v57  ;;  %v1021_v45 = vadd.f32 %v1017_v16, %v2674_v8  ;;  %v1033_v37 = vmul.f32 %v1030_v39, %v982_v14  ;;  %v1035_v4 = vadd.f32 %v1031_v18, %v1026_v28 }
  0xfd   : > { %v1020_v40 = vmul.f32 %v1423_v27, %v1016_v57  ;;  %v1022_v36 = vadd.f32 %v1018_v41, %v2678_v15  ;;  %v1034_v2 = vmul.f32 %v1030_v39, %v983_v46  ;;  %v1036_v61 = vadd.f32 %v1032_v35, %v1027_v5 }
  0xfe   : > { %v1023_v43 = vadd.f32 %v1019_v21, %v2683_v34  ;;  %v1037_v56 = vadd.f32 %v1033_v37, %v1028_v3  ;;  %v1040_v53 = vmul.f32 %v1039_v13, %v1021_v45 }
  0xff   : > { %v1024_v0 = vadd.f32 %v1020_v40, %v2688_v62  ;;  %v1038_v51 = vadd.f32 %v1034_v2, %v1029_v12  ;;  %v1041_v48 = vmul.f32 %v1039_v13, %v1022_v36  ;;  %v1057_v62 = vstv %s702_s17 }
 0x100   : > { %v1042_v47 = vmul.f32 %v1039_v13, %v1023_v43  ;;  %v1044_v42 = vadd.f32 %v1040_v53, %v1035_v4 }
 0x101   : > { %v1043_v9 = vmul.f32 %v1039_v13, %v1024_v0  ;;  %v1045_v8 = vadd.f32 %v1041_v48, %v1036_v61 }
 0x102   : > { %v1046_v10 = vadd.f32 %v1042_v47, %v1037_v56  ;;  %v1049_v58 = vadd.f32 %v1048_v6, %v1044_v42 }
 0x103   : > { %v1047_v7 = vadd.f32 %v1043_v9, %v1038_v51  ;;  %v1050_v15 = vadd.f32 %v1048_v6, %v1045_v8 }
 0x104   : > { %v1051_v52 = vadd.f32 %v1048_v6, %v1046_v10  ;;  %1424 = vtanh.f32 %v1049_v58 }
 0x105   : > { %v1052_v34 = vadd.f32 %v1048_v6, %v1047_v7  ;;  %1426 = vtanh.f32 %v1050_v15 }
 0x106   : > { %1428 = vtanh.f32 %v1051_v52 }
 0x107   : > { %1430 = vtanh.f32 %v1052_v34 }
 0x111   : > { %v1425_v44 = vpop.eup %1424 }
 0x112   : > { %v1427_v22 = vpop.eup %1426  ;;  %v1058_v63 = vmul.f32 %v1425_v44, %v1057_v62 }
 0x113   : > { %v1429_v29 = vpop.eup %1428  ;;  %v1059_v23 = vmul.f32 %v1427_v22, %v1057_v62 }
 0x114   : > { %v1431_v32 = vpop.eup %1430  ;;  %v1060_v54 = vmul.f32 %v1429_v29, %v1057_v62  ;;  %v1062_v60 = vadd.f32 %v1058_v63, %v1049_v58 }
 0x115   : > { %v1061_v50 = vmul.f32 %v1431_v32, %v1057_v62  ;;  %v1063_v26 = vadd.f32 %v1059_v23, %v1050_v15 }
 0x116   : > { %v1064_v59 = vadd.f32 %v1060_v54, %v1051_v52  ;;  %1191 = vst [vmem:[%s2501_s14 + $0x20] sm:$0xff] %v1062_v60 }
 0x117   : > { %v1065_v17 = vadd.f32 %v1061_v50, %v1052_v34  ;;  %1192 = vst [vmem:[%s2501_s14 + $0x28] sm:$0xff] %v1063_v26 }
 0x118   : > { %1193 = vst [vmem:[%s2501_s14 + $0x30] sm:$0xff] %v1064_v59 }
 0x119   : > { %1194 = vst [vmem:[%s2501_s14 + $0x38] sm:$0xff] %v1065_v17 }
 0x11a   : > { %1481 = shalt.err (!%p1478_p6)
}
 0x11b   : > { %s1482_s14 = scalar_lea.hbm %s2718_s9, 1024  ;;  %s1486_s1 = scalar_lea.hbm %s2773_s2, 2048 }
 0x11c   : > { %p1483_p7 = scmp.ne.s32.totalorder %s2718_s9, %s1482_s14  ;;  %p1487_p13 = scmp.lt.s32.totalorder %s2718_s9, %s2773_s2 }
 0x11d   : > { %p1488_p2 = scmp.lt.s32.totalorder %s1486_s1, %s1482_s14 }
 0x11e   : > { %p1484_p10 = pnand %p1483_p7, %p1628_p9 }
 0x11f   : > { %p1489_p8 = por %p1488_p2, %p1487_p13 }
 0x120   : > { %p1485_p4 = pneg %p1484_p10 }
 0x122   : > { %p1490_p12 = pnand %p1489_p8, %p1485_p4 }
 0x124   : > { %1493 = shalt.err (!%p1490_p12)
}
 0x125   : > { %s1557_s25 = smov 128   ;;  %s1558_s13 = smov 8  }
 0x126   : > { %1207 = dma.vmem_to_hbm [thread:$0]  (%p1628_p9), %s2720_s22, 1024, %s2718_s9, %s1072_s15, %s1557_s25, %s1557_s25, %s1558_s13  }
 0x127 PF: > { %s2795_s28 = sld [smem:[#allocation14_spill]]  ;;  %s1103_s7 = sand.u32 1, %s1530_s12  }
 0x128   : > { %s1104_s11 = scalar_lea.sflag [#allocation6], %s1103_s7 }
 0x12d   : > { %p2796_p0 = scmp.ge.s32.totalorder %s2795_s28, 2 }
 0x12f   : > { %p1214_p1 = pnand %p2796_p0, %p1635_p11 }
 0x131   : > { %p1215_p3 = pneg %p1214_p1 }
 0x133   : > { %1525 = dma.done.wait (%p1215_p3), %s1104_s11, 1024  }
 0x134   : > { %1527 = vsyncadd (%p1215_p3), %s1104_s11, 4294966272  ;;  %s22_s17 = sadd.s32 1, %s2795_s28   ;;  %s2797_s12 = sld [smem:[#allocation11_spill]] }
 0x135   : > { %p19_p5 = scmp.ge.s32.totalorder %s22_s17, 4   ;;  %s2798_s13 = sld [smem:[#allocation12_spill]] }
 0x136   : > { %s2799_s14 = sld [smem:[#allocation16_spill]] }
 0x137   : > { %s2800_s15 = sld [smem:[#allocation13_spill]]  ;;  %21 = sbr.rel (!%p19_p5) target bundleno = 12 (0xc), region = 71 }
 0x138   : > { %s2801_s16 = sld [smem:[#allocation15_spill]] }
 0x13c   :  { %1109 = vsyncpa [#allocation5], 1 }
 0x13d   :  { %1111 = vsyncpa [#allocation5 + $0x1], 1 }
 0x13e   :  { %1112 = vsyncpa [#allocation6], 1 }
 0x13f   :  { %1114 = vsyncpa [#allocation6 + $0x1], 1 }

</bundles_post_ra>
